<compile_context>
chip_gen: v7x
topology: tpu7x:2x2x1
jax: 0.10.0
libtpu: 0.0.40
codegen_flags: <defaults>
</compile_context>

<pallas_src>
import functools

import jax
import jax.numpy as jnp
from jax.experimental import pallas as pl
from jax.experimental.pallas import tpu as pltpu

f32 = jnp.float32


# ------------------------------------------------------------------ kernel ---

def generator_kernel(x_ref, w1_ref, b1_ref, w2_ref, b2_ref, qbig_ref, bsum_ref,
                     out_ref, *, n_sel):
    """One batch tile: MLP -> folded (chol_h + rho + measurement) quadratic form."""
    # net(X): Linear -> LeakyReLU(0.01) -> Linear                         (Bt, DD)
    h = jnp.dot(x_ref[...], w1_ref[...], preferred_element_type=f32) + b1_ref[...]
    h = jnp.where(h >= 0.0, h, 0.01 * h)                  # nn.LeakyReLU default slope
    t = jnp.dot(h, w2_ref[...], preferred_element_type=f32) + b2_ref[...]
    dd = t.shape[1]

    # Quadratic form, per sample s and observable k (k == n_sel is the trace):
    #     R[s, k] = sum_{a,b} t[s,a] * t[s,b] * A_k[a,b]
    # realized with two lane-dense MXU dots + one VPU multiply:
    #     y[s, k*DD + a] = sum_b t[s,b] * qbig[b, k*DD + a]       (= (A_k t_s)[a])
    #     z = y * [t | t | ... | t]                               (lane-tiled t)
    #     R = z @ bsum                                            (0/1 block-sum matrix)
    y = jnp.dot(t, qbig_ref[...], preferred_element_type=f32)          # (Bt, (n_sel+1)*DD)
    t_rep = jnp.concatenate([t] * (n_sel + 1), axis=1)                 # (Bt, (n_sel+1)*DD)
    r = jnp.dot(y * t_rep, bsum_ref[...], preferred_element_type=f32)  # (Bt, n_sel+1)

    # P[s, k] = numerator / trace   (exact divide; trace > 0 for generic weights)
    out_ref[...] = r[:, :n_sel] / r[:, n_sel:n_sel + 1]


# ----------------------------------------------------------------- wrapper ---

def generator_forward(x, w1, b1, w2, b2, qbig, bsum, *, block_b=32):
    """Batched forward: x (B, in_size) -> P (B, Ksel)."""
    B, in_size = x.shape
    n_sel = bsum.shape[1] - 1
    bp = pl.cdiv(B, block_b) * block_b
    if bp != B:                                           # pad batch to a tile multiple
        x = jnp.pad(x, ((0, bp - B), (0, 0)))

    out = pl.pallas_call(
        functools.partial(generator_kernel, n_sel=n_sel),
        out_shape=jax.ShapeDtypeStruct((bp, n_sel), f32),
        grid=(bp // block_b,),
        in_specs=[
            pl.BlockSpec((block_b, in_size), lambda b: (b, 0)),   # batch tile per step
            pl.BlockSpec(w1.shape, lambda b: (0, 0)),             # weights / packed ops
            pl.BlockSpec(b1.shape, lambda b: (0, 0)),             # stay VMEM-resident
            pl.BlockSpec(w2.shape, lambda b: (0, 0)),             # (constant block index
            pl.BlockSpec(b2.shape, lambda b: (0, 0)),             #  => no re-DMA)
            pl.BlockSpec(qbig.shape, lambda b: (0, 0)),
            pl.BlockSpec(bsum.shape, lambda b: (0, 0)),
        ],
        out_specs=pl.BlockSpec((block_b, n_sel), lambda b: (b, 0)),
        compiler_params=pltpu.CompilerParams(
            dimension_semantics=("parallel",)),           # both TCs on v7x; no-op on v5e/v6e
    )(x, w1, b1, w2, b2, qbig, bsum)
    return out[:B]


# ------------------------------------------------ host-side constant packing -

def build_kron_ops(M, num_qubits):
    """Op[k1..kN] = M[k1] (x) ... (x) M[kN]  -> (K^N, 2^N, 2^N) complex."""
    Ops = M
    K = M.shape[0]
    for _ in range(num_qubits - 1):
        a, d1, d2 = Ops.shape
        Ops = jnp.einsum('aij,bkl->abikjl', Ops, M).reshape(a * K, d1 * 2, d2 * 2)
    return Ops


def build_chol_map(D):
    """L[i,j,a] with T[i,j] = sum_a L[i,j,a] * t[a]  (t = vec(T_m) row-major, chol_h map)."""
    i = jnp.arange(D).reshape(D, 1, 1, 1)
    j = jnp.arange(D).reshape(1, D, 1, 1)
    p = jnp.arange(D).reshape(1, 1, D, 1)
    q = jnp.arange(D).reshape(1, 1, 1, D)
    d_ij = ((p == i) & (q == j)).astype(jnp.complex64)    # picks Tm[i, j]
    d_ji = ((p == j) & (q == i)).astype(jnp.complex64)    # picks Tm[j, i]
    # final Hermitian T:  i>j: Tm[i,j] + 1j*Tm[j,i];  i=j: Tm[i,i];  i<j: Tm[j,i] - 1j*Tm[i,j]
    c1 = jnp.where(i >= j, 1.0 + 0.0j, -1.0j)
    c2 = jnp.where(i > j, 1.0j, jnp.where(i < j, 1.0 + 0.0j, 0.0 + 0.0j))
    Lfull = d_ij * c1 + d_ji * c2                          # (D, D, D, D)
    return Lfull.reshape(D, D, D * D)


def pack_quadratic_ops(M, num_qubits, P_idxs):
    """Fold chol_h + rho + measurement + trace into real quadratic forms.

    Returns qbig (DD, (Ksel+1)*DD) and bsum ((Ksel+1)*DD, Ksel+1) such that the kernel's
    two dots reproduce  num[k] = Re Tr((T@T) Op_k)  and  num[Ksel] = Tr(T^H T)  exactly.
    """
    D = 2 ** num_qubits
    DD = D * D
    L = build_chol_map(D)                                          # (D, D, DD) complex
    Ops = build_kron_ops(M, num_qubits)[jnp.asarray(P_idxs)]       # (Ksel, D, D) complex
    # Re Tr(Op_k (T@T)) = sum_{a,b} t_a t_b * Re( sum_{i,j,m} Op_k[i,j] L[j,m,a] L[m,i,b] )
    A_meas = jnp.real(jnp.einsum('kij,jma,mib->kab', Ops, L, L))   # (Ksel, DD, DD)
    # trace(T^H T) = sum_{i,m} |T[i,m]|^2 = sum_{a,b} t_a t_b * Re( conj(L)[i,m,a] L[i,m,b] )
    A_tr = jnp.real(jnp.einsum('ima,imb->ab', jnp.conj(L), L))     # (DD, DD)
    A_all = jnp.concatenate([A_meas, A_tr[None]], axis=0)          # (Ksel+1, DD, DD)
    k1 = A_all.shape[0]
    qbig = jnp.transpose(A_all, (2, 0, 1)).reshape(DD, k1 * DD).astype(f32)
    bsum = (jnp.arange(k1 * DD)[:, None] // DD == jnp.arange(k1)[None, :]).astype(f32)
    return qbig, bsum


# -------------------------------------------------------- pure-JAX reference -

def reference_forward(x, w1, b1, w2, b2, M, num_qubits, P_idxs):
    """Faithful step-by-step port of the torch module (mixed + chol_h), batched by vmap."""
    h = x @ w1 + b1
    h = jnp.where(h >= 0.0, h, 0.01 * h)
    t = h @ w2 + b2                                                # (B, D*D)
    D = 2 ** num_qubits
    Ops = build_kron_ops(M, num_qubits)[jnp.asarray(P_idxs)]       # (Ksel, D, D)

    def one(tv):
        Tm = tv.reshape(D, D)
        T = jnp.tril(Tm) + 1j * jnp.triu(Tm, 1).T
        T = T + jnp.conj(jnp.tril(T, -1).T)
        Ttemp = jnp.conj(T).T @ T
        rho = Ttemp / jnp.trace(Ttemp)
        P = jnp.einsum('kij,ji->k', Ops, rho)                      # Tr(Op_k rho)
        return jnp.real(P).astype(f32)

    return jax.vmap(one)(t)


# ------------------------------------------------------------------- main ----

if __name__ == "__main__":
    num_qubits = 3
    in_size = 8
    D = 2 ** num_qubits                      # 8
    out_size = 4 ** num_qubits               # 64  (type_state='mixed')
    hidden = 2 * num_qubits                  # 6
    B = 64                                   # batch of latent samples
    BLOCK_B = 32                             # samples per grid step

    key = jax.random.PRNGKey(0)
    k1, k2, k3, k4, kx = jax.random.split(key, 5)
    w1 = jax.random.normal(k1, (in_size, hidden), f32) * 0.5
    b1 = jax.random.normal(k2, (1, hidden), f32) * 0.1
    w2 = jax.random.normal(k3, (hidden, out_size), f32) * 0.5
    b2 = jax.random.normal(k4, (1, out_size), f32) * 0.1
    x = jax.random.normal(kx, (B, in_size), f32)

    # Single-qubit measurement operators M: Pauli basis {I, X, Y, Z}  (K = 4)
    I2 = jnp.array([[1, 0], [0, 1]], jnp.complex64)
    Sx = jnp.array([[0, 1], [1, 0]], jnp.complex64)
    Sy = jnp.array([[0, -1j], [1j, 0]], jnp.complex64)
    Sz = jnp.array([[1, 0], [0, -1]], jnp.complex64)
    M = jnp.stack([I2, Sx, Sy, Sz])                                  # (4, 2, 2)
    P_idxs = jnp.arange(0, M.shape[0] ** num_qubits, 2, dtype=jnp.int32)   # 32 settings

    with jax.default_matmul_precision("highest"):
        qbig, bsum = pack_quadratic_ops(M, num_qubits, P_idxs)       # (64, 2112), (2112, 33)

    fwd = jax.jit(functools.partial(generator_forward, block_b=BLOCK_B))
    P_out = jax.block_until_ready(fwd(x, w1, b1, w2, b2, qbig, bsum))

    with jax.default_matmul_precision("highest"):
        P_ref = reference_forward(x, w1, b1, w2, b2, M, num_qubits, P_idxs)

    assert P_out.shape == P_ref.shape == (B, int(P_idxs.shape[0]))
    assert P_out.dtype == jnp.float32
    # 2e-3 leaves headroom for MXU f32 rounding on the folded quadratic-form contractions.
    assert jnp.allclose(P_out, P_ref, rtol=2e-3, atol=2e-3), (P_out, P_ref)

    print("KERNEL_OK")
</pallas_src>

<mosaic_0001>
module attributes {stable_mosaic.version = 11 : i64} {
  func.func @generator_kernel(%arg0: i32, %arg1: memref<32x8xf32, #tpu.memory_space<vmem>>, %arg2: memref<8x6xf32, #tpu.memory_space<vmem>>, %arg3: memref<1x6xf32, #tpu.memory_space<vmem>>, %arg4: memref<6x64xf32, #tpu.memory_space<vmem>>, %arg5: memref<1x64xf32, #tpu.memory_space<vmem>>, %arg6: memref<64x2112xf32, #tpu.memory_space<vmem>>, %arg7: memref<2112x33xf32, #tpu.memory_space<vmem>>, %arg8: memref<32x32xf32, #tpu.memory_space<vmem>>) attributes {dimension_semantics = [#tpu.dimension_semantics<parallel>], iteration_bounds = array<i64: 2>, scalar_prefetch = 0 : i64, scratch_operands = 0 : i64, tpu.core_type = #tpu.core_type<tc>, window_params = [{transform_indices = @transform_0, window_bounds = array<i64: 32, 8>}, {pipeline_mode = #tpu.pipeline_mode<synchronous>, transform_indices = @transform_1, window_bounds = array<i64: 8, 6>}, {pipeline_mode = #tpu.pipeline_mode<synchronous>, transform_indices = @transform_2, window_bounds = array<i64: 1, 6>}, {pipeline_mode = #tpu.pipeline_mode<synchronous>, transform_indices = @transform_3, window_bounds = array<i64: 6, 64>}, {pipeline_mode = #tpu.pipeline_mode<synchronous>, transform_indices = @transform_4, window_bounds = array<i64: 1, 64>}, {pipeline_mode = #tpu.pipeline_mode<synchronous>, transform_indices = @transform_5, window_bounds = array<i64: 64, 2112>}, {pipeline_mode = #tpu.pipeline_mode<synchronous>, transform_indices = @transform_6, window_bounds = array<i64: 2112, 33>}, {transform_indices = @transform_7, window_bounds = array<i64: 32, 32>}]} {
    %c0 = arith.constant 0 : index
    %c0_0 = arith.constant 0 : index
    %0 = vector.load %arg1[%c0, %c0_0] : memref<32x8xf32, #tpu.memory_space<vmem>>, vector<32x8xf32>
    %c0_1 = arith.constant 0 : index
    %c0_2 = arith.constant 0 : index
    %1 = vector.load %arg2[%c0_1, %c0_2] : memref<8x6xf32, #tpu.memory_space<vmem>>, vector<8x6xf32>
    %cst = arith.constant dense<0.000000e+00> : vector<32x6xf32>
    %2 = tpu.matmul %0, %1, %cst {dimension_numbers = #tpu.dot_dimension_numbers<[1], [0], [0], [1], [0, 0, 1, 1], [], []>} : vector<32x8xf32>, vector<8x6xf32>, vector<32x6xf32> -> vector<32x6xf32>
    %c0_3 = arith.constant 0 : index
    %c0_4 = arith.constant 0 : index
    %3 = vector.load %arg3[%c0_3, %c0_4] : memref<1x6xf32, #tpu.memory_space<vmem>>, vector<1x6xf32>
    %4 = vector.broadcast %3 : vector<1x6xf32> to vector<32x6xf32>
    %5 = arith.addf %2, %4 : vector<32x6xf32>
    %cst_5 = arith.constant 0.000000e+00 : f32
    %6 = vector.broadcast %cst_5 : f32 to vector<32x6xf32>
    %7 = arith.cmpf oge, %5, %6 : vector<32x6xf32>
    %cst_6 = arith.constant 0.00999999977 : f32
    %8 = vector.broadcast %cst_6 : f32 to vector<32x6xf32>
    %9 = arith.mulf %8, %5 : vector<32x6xf32>
    %10 = arith.select %7, %5, %9 : vector<32x6xi1>, vector<32x6xf32>
    %c0_7 = arith.constant 0 : index
    %c0_8 = arith.constant 0 : index
    %11 = vector.load %arg4[%c0_7, %c0_8] : memref<6x64xf32, #tpu.memory_space<vmem>>, vector<6x64xf32>
    %cst_9 = arith.constant dense<0.000000e+00> : vector<32x64xf32>
    %12 = tpu.matmul %10, %11, %cst_9 {dimension_numbers = #tpu.dot_dimension_numbers<[1], [0], [0], [1], [0, 0, 1, 1], [], []>} : vector<32x6xf32>, vector<6x64xf32>, vector<32x64xf32> -> vector<32x64xf32>
    %c0_10 = arith.constant 0 : index
    %c0_11 = arith.constant 0 : index
    %13 = vector.load %arg5[%c0_10, %c0_11] : memref<1x64xf32, #tpu.memory_space<vmem>>, vector<1x64xf32>
    %14 = vector.broadcast %13 : vector<1x64xf32> to vector<32x64xf32>
    %15 = arith.addf %12, %14 : vector<32x64xf32>
    %c0_12 = arith.constant 0 : index
    %c0_13 = arith.constant 0 : index
    %16 = vector.load %arg6[%c0_12, %c0_13] : memref<64x2112xf32, #tpu.memory_space<vmem>>, vector<64x2112xf32>
    %cst_14 = arith.constant dense<0.000000e+00> : vector<32x2112xf32>
    %17 = tpu.matmul %15, %16, %cst_14 {dimension_numbers = #tpu.dot_dimension_numbers<[1], [0], [0], [1], [0, 0, 1, 1], [], []>} : vector<32x64xf32>, vector<64x2112xf32>, vector<32x2112xf32> -> vector<32x2112xf32>
    %18 = tpu.concatenate %15, %15, %15, %15, %15, %15, %15, %15, %15, %15, %15, %15, %15, %15, %15, %15 in 1 : vector<32x64xf32>, vector<32x64xf32>, vector<32x64xf32>, vector<32x64xf32>, vector<32x64xf32>, vector<32x64xf32>, vector<32x64xf32>, vector<32x64xf32>, vector<32x64xf32>, vector<32x64xf32>, vector<32x64xf32>, vector<32x64xf32>, vector<32x64xf32>, vector<32x64xf32>, vector<32x64xf32>, vector<32x64xf32> -> vector<32x1024xf32>
    %19 = tpu.concatenate %15, %15, %15, %15, %15, %15, %15, %15, %15, %15, %15, %15, %15, %15, %15, %15 in 1 : vector<32x64xf32>, vector<32x64xf32>, vector<32x64xf32>, vector<32x64xf32>, vector<32x64xf32>, vector<32x64xf32>, vector<32x64xf32>, vector<32x64xf32>, vector<32x64xf32>, vector<32x64xf32>, vector<32x64xf32>, vector<32x64xf32>, vector<32x64xf32>, vector<32x64xf32>, vector<32x64xf32>, vector<32x64xf32> -> vector<32x1024xf32>
    %20 = tpu.concatenate %18, %19, %15 in 1 : vector<32x1024xf32>, vector<32x1024xf32>, vector<32x64xf32> -> vector<32x2112xf32>
    %21 = arith.mulf %17, %20 : vector<32x2112xf32>
    %c0_15 = arith.constant 0 : index
    %c0_16 = arith.constant 0 : index
    %22 = vector.load %arg7[%c0_15, %c0_16] : memref<2112x33xf32, #tpu.memory_space<vmem>>, vector<2112x33xf32>
    %cst_17 = arith.constant dense<0.000000e+00> : vector<32x33xf32>
    %23 = tpu.matmul %21, %22, %cst_17 {dimension_numbers = #tpu.dot_dimension_numbers<[1], [0], [0], [1], [0, 0, 1, 1], [], []>} : vector<32x2112xf32>, vector<2112x33xf32>, vector<32x33xf32> -> vector<32x33xf32>
    %24 = vector.extract_strided_slice %23 {offsets = [0, 0], sizes = [32, 32], strides = [1, 1]} : vector<32x33xf32> to vector<32x32xf32>
    %25 = vector.extract_strided_slice %23 {offsets = [0, 32], sizes = [32, 1], strides = [1, 1]} : vector<32x33xf32> to vector<32x1xf32>
    %26 = vector.broadcast %25 : vector<32x1xf32> to vector<32x32xf32>
    %27 = arith.divf %24, %26 : vector<32x32xf32>
    %c0_18 = arith.constant 0 : index
    %c0_19 = arith.constant 0 : index
    %28 = vector.load %arg8[%c0_18, %c0_19] : memref<32x32xf32, #tpu.memory_space<vmem>>, vector<32x32xf32>
    tpu.vector_store %arg8[%c0_18, %c0_19], %27 {strides = array<i32>} : memref<32x32xf32, #tpu.memory_space<vmem>>, vector<32x32xf32>,
    return
  }
  func.func @transform_0(%arg0: i32) -> (i32, i32) {
    %c0_i32 = arith.constant 0 : i32
    %c0_i32_0 = arith.constant 0 : i32
    return %arg0, %c0_i32 : i32, i32
  }
  func.func @transform_1(%arg0: i32) -> (i32, i32) {
    %c0_i32 = arith.constant 0 : i32
    %c0_i32_0 = arith.constant 0 : i32
    %c0_i32_1 = arith.constant 0 : i32
    return %c0_i32, %c0_i32_0 : i32, i32
  }
  func.func @transform_2(%arg0: i32) -> (i32, i32) {
    %c0_i32 = arith.constant 0 : i32
    %c0_i32_0 = arith.constant 0 : i32
    %c0_i32_1 = arith.constant 0 : i32
    return %c0_i32, %c0_i32_0 : i32, i32
  }
  func.func @transform_3(%arg0: i32) -> (i32, i32) {
    %c0_i32 = arith.constant 0 : i32
    %c0_i32_0 = arith.constant 0 : i32
    %c0_i32_1 = arith.constant 0 : i32
    return %c0_i32, %c0_i32_0 : i32, i32
  }
  func.func @transform_4(%arg0: i32) -> (i32, i32) {
    %c0_i32 = arith.constant 0 : i32
    %c0_i32_0 = arith.constant 0 : i32
    %c0_i32_1 = arith.constant 0 : i32
    return %c0_i32, %c0_i32_0 : i32, i32
  }
  func.func @transform_5(%arg0: i32) -> (i32, i32) {
    %c0_i32 = arith.constant 0 : i32
    %c0_i32_0 = arith.constant 0 : i32
    %c0_i32_1 = arith.constant 0 : i32
    return %c0_i32, %c0_i32_0 : i32, i32
  }
  func.func @transform_6(%arg0: i32) -> (i32, i32) {
    %c0_i32 = arith.constant 0 : i32
    %c0_i32_0 = arith.constant 0 : i32
    %c0_i32_1 = arith.constant 0 : i32
    return %c0_i32, %c0_i32_0 : i32, i32
  }
  func.func @transform_7(%arg0: i32) -> (i32, i32) {
    %c0_i32 = arith.constant 0 : i32
    %c0_i32_0 = arith.constant 0 : i32
    return %arg0, %c0_i32 : i32, i32
  }
}

</mosaic_0001>

<bundles_post_ra>
// kernel: generator_forward.1
= control target key start
LH: loop header
LB: loop body
LE: loop exit
PB: predicated region body
PF: predicated region fallthrough
CT: control target
= control target key end

     0   :  { %s3670_s24 = smov 0   ;;  %s5272_s0 = inlined_call_operand.vmem [shape: f32[64,8], index: 0, kind: input, shape index: {}]   ;;  %s5273_s1 = inlined_call_operand.vmem [shape: f32[8,6], index: 1, kind: input, shape index: {}]   ;;  %s5274_s2 = inlined_call_operand.vmem [shape: f32[1,6], index: 2, kind: input, shape index: {}]   ;;  %s5275_s3 = inlined_call_operand.vmem [shape: f32[6,64], index: 3, kind: input, shape index: {}]   ;;  %s5276_s4 = inlined_call_operand.vmem [shape: f32[1,64], index: 4, kind: input, shape index: {}]   ;;  %s5277_s5 = inlined_call_operand.vmem [shape: f32[64,2112], index: 5, kind: input, shape index: {}]   ;;  %s5278_s6 = inlined_call_operand.vmem [shape: f32[2112,33], index: 6, kind: input, shape index: {}]   ;;  %s5279_s7 = inlined_call_operand.vmem [shape: f32[64,32], index: 7, kind: output, shape index: {}]  }
   0x1 LB: > { %s2674_s25 = sadd.s32 4294967295, %s3625_s24   ;;  %p2678_p0 = scmp.ge.s32.totalorder %s3625_s24, 1  ;;  %s3625_s24 = sphi %s3670_s24, %s17_s24  }
   0x2   : > { %p238_p1 = scmp.lt.s32.totalorder %s3625_s24, 3 }
   0x4   : > { %p239_p2 = pnand %p2678_p0, %p238_p1 }
   0x5   : > { %v286_v0 = vld [vmem:[%s5273_s1] sm:$0xff] (!%p239_p2)  ;;  %s2679_s28 = sshll.u32 (!%p239_p2), %s2674_s25, 2  ;;  %vm294_vm0 = vcmask (!%p239_p2), 64512   ;;  %vm425_vm1 = vcmask (!%p239_p2), 1045504   ;;  %v515_v6 = vld [vmem:[%s5277_s5 + $0x8] sm:$0xff] (!%p239_p2)  ;;  %v532_v7 = vld [vmem:[%s5277_s5 + $0x90] sm:$0xff] (!%p239_p2) }
   0x6   : > { %242 = sbr.rel (%p239_p2) target bundleno = 1146 (0x47a), region = 48  ;;  %3122 = vmatprep.subr.mxu0 (!%p239_p2), %v286_v0  ;;  %p271_p3 = scmp.lt.s32.totalorder (!%p239_p2), %s2679_s28, 7  ;;  %v404_v5 = vld [vmem:[%s5275_s3] sm:$0x3f] (!%p239_p2)  ;;  %v517_v8 = vld [vmem:[%s5277_s5 + $0x18] sm:$0xff] (!%p239_p2)  ;;  %v3182_v9 = vpack.c.bf16 (!%p239_p2), %v532_v7, %v515_v6  ;;  %v531_v12 = vld [vmem:[%s5277_s5 + $0x88] sm:$0xff] (!%p239_p2) }
   0x7   : > { %3123 = vmatpush3.msra.mxu0 (!%p239_p2), %v286_v0  ;;  %3130 = vmatprep.subr.msk.mxu1 (!%p239_p2), %vm425_vm1, %v404_v5  ;;  %v534_v10 = vld [vmem:[%s5277_s5 + $0xa0] sm:$0xff] (!%p239_p2)  ;;  %v549_v15 = vld [vmem:[%s5277_s5 + $0x118] sm:$0xff] (!%p239_p2)  ;;  %v548_v18 = vld [vmem:[%s5277_s5 + $0x110] sm:$0xff] (!%p239_p2)  ;;  %vm412_vm4 = vcmask (!%p239_p2), 48128   ;;  %vm650_vm7 = vcmask (!%p239_p2), 523264   ;;  %s3628_s8 = smov (!%p239_p2), 64  }
   0x8   : > { %3131 = vmatpush3.msk.msra.mxu1 (!%p239_p2), %vm425_vm1, %v404_v5  ;;  %v514_v11 = vld [vmem:[%s5277_s5] sm:$0xff] (!%p239_p2)  ;;  %v3198_v13 = vpack.c.bf16 (!%p239_p2), %v534_v10, %v517_v8  ;;  %3183 = vmatprep.subr.bf16.mxu0 (!%p239_p2), %v3182_v9  ;;  %v565_v19 = vld [vmem:[%s5277_s5 + $0x198] sm:$0xff] (!%p239_p2)  ;;  %v583_v21 = vld [vmem:[%s5277_s5 + $0x228] sm:$0xff] (!%p239_p2)  ;;  %vm2613_vm8 = vcmask (!%p239_p2), 261120  }
   0x9   : > { %v3184_v14 = vpack.c.bf16 (!%p239_p2), %v531_v12, %v514_v11  ;;  %v566_v16 = vld [vmem:[%s5277_s5 + $0x1a0] sm:$0xff] (!%p239_p2)  ;;  %v3188_v20 = vpack.c.bf16 (!%p239_p2), %v565_v19, %v548_v18  ;;  %v600_v22 = vld [vmem:[%s5277_s5 + $0x2b0] sm:$0xff] (!%p239_p2)  ;;  %v599_v25 = vld [vmem:[%s5277_s5 + $0x2a8] sm:$0xff] (!%p239_p2)  ;;  %v3627_v12 = vmov (!%p239_p2), 0.0  }
   0xa   : > { %3199 = vmatprep.subr.bf16.mxu1 (!%p239_p2), %v3198_v13  ;;  %v3186_v17 = vpack.c.bf16 (!%p239_p2), %v566_v16, %v549_v15  ;;  %v3190_v23 = vpack.c.bf16 (!%p239_p2), %v600_v22, %v583_v21  ;;  %v582_v24 = vld [vmem:[%s5277_s5 + $0x220] sm:$0xff] (!%p239_p2)  ;;  %v516_v32 = vld [vmem:[%s5277_s5 + $0x10] sm:$0xff] (!%p239_p2)  ;;  %v533_v33 = vld [vmem:[%s5277_s5 + $0x98] sm:$0xff] (!%p239_p2) }
   0xb   : > { %v3192_v26 = vpack.c.bf16 (!%p239_p2), %v599_v25, %v582_v24  ;;  %v2683_v27 = vld [vmem:[%s5274_s2] ss:$0 sm:$0xff] (!%p239_p2)  ;;  %v551_v35 = vld [vmem:[%s5277_s5 + $0x128] sm:$0xff] (!%p239_p2)  ;;  %v568_v36 = vld [vmem:[%s5277_s5 + $0x1b0] sm:$0xff] (!%p239_p2)  ;;  %v3200_v41 = vpack.c.bf16 (!%p239_p2), %v533_v33, %v516_v32 }
   0xc   : > { %v3202_v44 = vpack.c.bf16 (!%p239_p2), %v568_v36, %v551_v35  ;;  %v550_v45 = vld [vmem:[%s5277_s5 + $0x120] sm:$0xff] (!%p239_p2)  ;;  %v567_v46 = vld [vmem:[%s5277_s5 + $0x1a8] sm:$0xff] (!%p239_p2)  ;;  %v585_v49 = vld [vmem:[%s5277_s5 + $0x238] sm:$0xff] (!%p239_p2) }
   0xd   : > { %s5281_s28 = smov (!%p271_p3, %s2679_s28), 7  ;;  %v602_v50 = vld [vmem:[%s5277_s5 + $0x2c0] sm:$0xff]  ;;  %v3204_v53 = vpack.c.bf16 %v567_v46, %v550_v45  ;;  %v584_v56 = vld [vmem:[%s5277_s5 + $0x230] sm:$0xff]  ;;  %v601_v57 = vld [vmem:[%s5277_s5 + $0x2b8] sm:$0xff] }
   0xe   : > { %s2680_s29 = sshll.u32 %s5281_s28, 3  ;;  %v3206_v55 = vpack.c.bf16 %v602_v50, %v585_v49  ;;  %v3208_v58 = vpack.c.bf16 %v601_v57, %v584_v56  ;;  %v617_v59 = vld [vmem:[%s5277_s5 + $0x338] sm:$0xff]  ;;  %v634_v60 = vld [vmem:[%s5277_s5 + $0x3c0] sm:$0xff]  ;;  %v619_v61 = vld [vmem:[%s5277_s5 + $0x348] sm:$0xff] }
   0xf   : > { %s274_s9 = scalar_lea.vmem %s5272_s0, %s2680_s29  ;;  %v3194_v62 = vpack.c.bf16 %v634_v60, %v617_v59  ;;  %v636_v63 = vld [vmem:[%s5277_s5 + $0x3d0] sm:$0xff]  ;;  %v635_v5 = vld [vmem:[%s5277_s5 + $0x3c8] sm:$0xff]  ;;  %v521_v9 = vld [vmem:[%s5277_s5 + $0x38] sm:$0xff]  ;;  %s280_s20 = scalar_lea.vmem %s5279_s7, %s2680_s29 }
  0x10   : > { %v282_v1 = vld [vmem:[%s274_s9] sm:$0xff]  ;;  %v283_v2 = vld [vmem:[%s274_s9 + $0x8] sm:$0xff]  ;;  %v284_v3 = vld [vmem:[%s274_s9 + $0x10] sm:$0xff] }
  0x11   : > { %3124 = vmatprep.mubr.msk.f32.mxu0 %vm294_vm0, %v282_v1  ;;  %v285_v4 = vld [vmem:[%s274_s9 + $0x18] sm:$0xff]  ;;  %v616_v0 = vld [vmem:[%s5277_s5 + $0x330] sm:$0xff]  ;;  %v519_v7 = vld [vmem:[%s5277_s5 + $0x28] sm:$0xff] }
  0x12   : > { %3125 = vmatmul.mubr.msk.f32.vlgmr.msra.gmra.mrb[0].mxu0 %vm294_vm0, %v283_v2  ;;  %v633_v1 = vld [vmem:[%s5277_s5 + $0x3b8] sm:$0xff]  ;;  %v3210_v2 = vpack.c.bf16 %v636_v63, %v619_v61  ;;  %v536_v8 = vld [vmem:[%s5277_s5 + $0xb0] sm:$0xff]  ;;  %v538_v11 = vld [vmem:[%s5277_s5 + $0xc0] sm:$0xff] }
  0x13   : > { %3127 = vmatprep.mubr.msk.f32.mxu0 %vm294_vm0, %v284_v3  ;;  %3185 = vmatpush1.bf16.msra.mxu0 %v3184_v14  ;;  %v3196_v3 = vpack.c.bf16 %v633_v1, %v616_v0  ;;  %v3214_v10 = vpack.c.bf16 %v536_v8, %v519_v7  ;;  %v3230_v13 = vpack.c.bf16 %v538_v11, %v521_v9  ;;  %v518_v14 = vld [vmem:[%s5277_s5 + $0x20] sm:$0xff]  ;;  %v535_v15 = vld [vmem:[%s5277_s5 + $0xa8] sm:$0xff]  ;;  %v537_v18 = vld [vmem:[%s5277_s5 + $0xb8] sm:$0xff] }
  0x14   : > { %3187 = vmatprep.subr.bf16.mxu0 %v3186_v17  ;;  %v2688_v16 = vld [vmem:[%s5276_s4] ss:$0 sm:$0xff]  ;;  %v520_v17 = vld [vmem:[%s5277_s5 + $0x30] sm:$0xff]  ;;  %v571_v33 = vld [vmem:[%s5277_s5 + $0x1c8] sm:$0xff] }
  0x15   : > { %v570_v21 = vld [vmem:[%s5277_s5 + $0x1c0] sm:$0xff]  ;;  %v3232_v25 = vpack.c.bf16 %v537_v18, %v520_v17  ;;  %v603_v45 = vld [vmem:[%s5277_s5 + $0x2c8] sm:$0xff]  ;;  %v640_v56 = vld [vmem:[%s5277_s5 + $0x3f0] sm:$0xff] }
  0x16   : > { %3128 = vmatmul.mubr.msk.f32.gmra.mrb[2].mxu0 %vm294_vm0, %v285_v4  ;;  %v618_v4 = vld [vmem:[%s5277_s5 + $0x340] sm:$0xff]  ;;  %v620_v57 = vld [vmem:[%s5277_s5 + $0x350] sm:$0xff]  ;;  %v639_v60 = vld [vmem:[%s5277_s5 + $0x3e8] sm:$0xff] }
  0x17   : > { %3189 = vmatpush1.bf16.msra.mxu0 %v3188_v20  ;;  %v3212_v6 = vpack.c.bf16 %v635_v5, %v618_v4  ;;  %727 = vmatprep.mubr.f32.mxu0 %v3627_v12  ;;  %v553_v20 = vld [vmem:[%s5277_s5 + $0x138] sm:$0xff]  ;;  %v554_v32 = vld [vmem:[%s5277_s5 + $0x140] sm:$0xff]  ;;  %v523_v61 = vld [vmem:[%s5277_s5 + $0x48] sm:$0xff] }
  0x18   : > { %3191 = vmatprep.subr.bf16.mxu0 %v3190_v23  ;;  %v3216_v23 = vpack.c.bf16 %v535_v15, %v518_v14  ;;  %v622_v59 = vld [vmem:[%s5277_s5 + $0x360] sm:$0xff]  ;;  %v540_v0 = vld [vmem:[%s5277_s5 + $0xd0] sm:$0xff]  ;;  %v525_v1 = vld [vmem:[%s5277_s5 + $0x58] sm:$0xff] }
  0x19   : > { %v3244_v4 = vpack.c.bf16 %v639_v60, %v622_v59  ;;  %v522_v5 = vld [vmem:[%s5277_s5 + $0x40] sm:$0xff]  ;;  %v524_v7 = vld [vmem:[%s5277_s5 + $0x50] sm:$0xff]  ;;  %v541_v8 = vld [vmem:[%s5277_s5 + $0xd8] sm:$0xff]  ;;  %v3246_v9 = vpack.c.bf16 %v540_v0, %v523_v61 }
  0x1a   : > { %v557_v11 = vld [vmem:[%s5277_s5 + $0x158] sm:$0xff]  ;;  %v559_v14 = vld [vmem:[%s5277_s5 + $0x168] sm:$0xff]  ;;  %v576_v15 = vld [vmem:[%s5277_s5 + $0x1f0] sm:$0xff]  ;;  %v3264_v17 = vpack.c.bf16 %v541_v8, %v524_v7 }
  0x1b   : > { %3193 = vmatpush1.bf16.msra.mxu0 %v3192_v26  ;;  %v555_v26 = vld [vmem:[%s5277_s5 + $0x148] sm:$0xff]  ;;  %v556_v18 = vld [vmem:[%s5277_s5 + $0x150] sm:$0xff]  ;;  %v545_v61 = vld [vmem:[%s5277_s5 + $0xf8] sm:$0xff] }
  0x1c   : > { %3195 = vmatprep.subr.bf16.mxu0 %v3194_v62  ;;  %v543_v59 = vld [vmem:[%s5277_s5 + $0xe8] sm:$0xff]  ;;  %v528_v60 = vld [vmem:[%s5277_s5 + $0x70] sm:$0xff]  ;;  %v561_v0 = vld [vmem:[%s5277_s5 + $0x178] sm:$0xff] }
  0x1d   : > { %v577_v7 = vld [vmem:[%s5277_s5 + $0x1f8] sm:$0xff]  ;;  %v562_v8 = vld [vmem:[%s5277_s5 + $0x180] sm:$0xff] }
  0x1f   : > { %3197 = vmatpush1.bf16.msra.mxu0 %v3196_v3 }
  0x20   : > { %3215 = vmatprep.subr.bf16.mxu0 %v3214_v10 }
  0xe5   : > { %v3126_v28 = vpop.f32.mrb[0].mxu0 }
  0xe6   : > { %v379_v29 = vadd.f32 %v3126_v28, %v2683_v27  ;;  %v373_v30 = vpop.f32.mrb[1].mxu0  ;;  %v3218_v28 = vpack.c.bf16 %v570_v21, %v553_v20  ;;  %v558_v20 = vld [vmem:[%s5277_s5 + $0x160] sm:$0xff]  ;;  %v575_v21 = vld [vmem:[%s5277_s5 + $0x1e8] sm:$0xff] }
  0xe7   : > { %v374_v31 = vadd.f32 %v2683_v27, %v373_v30  ;;  %v569_v30 = vld [vmem:[%s5277_s5 + $0x1b8] sm:$0xff] }
  0xe8   : > { %v397_v34 = vmul.f32 0.01, %v379_v29  ;;  %vm393_vm2 = vcmp.ge.f32.partialorder %v379_v29, 0.0 }
  0xe9   : > { %v3129_v37 = vpop.f32.mrb[2].mxu0  ;;  %vm392_vm3 = vcmp.ge.f32.partialorder %v374_v31, 0.0  ;;  %v396_v38 = vmul.f32 0.01, %v374_v31 }
  0xea   : > { %v389_v39 = vadd.f32 %v3129_v37, %v2683_v27  ;;  %v383_v40 = vpop.f32.mrb[3].mxu0  ;;  %v401_v48 = vsel %vm393_vm2, %v379_v29, %v397_v34  ;;  %v552_v29 = vld [vmem:[%s5277_s5 + $0x130] sm:$0xff] }
  0xeb   : > { %v384_v42 = vadd.f32 %v2683_v27, %v383_v40  ;;  %v400_v43 = vsel %vm392_vm3, %v374_v31, %v396_v38  ;;  %v572_v27 = vld [vmem:[%s5277_s5 + $0x1d0] sm:$0xff]  ;;  %v3220_v38 = vpack.c.bf16 %v569_v30, %v552_v29  ;;  %v3268_v30 = vpack.c.bf16 %v575_v21, %v558_v20  ;;  %v611_v20 = vld [vmem:[%s5277_s5 + $0x308] sm:$0xff] }
  0xec   : > { %vm395_vm5 = vcmp.ge.f32.partialorder %v389_v39, 0.0  ;;  %v399_v47 = vmul.f32 0.01, %v389_v39  ;;  %3132 = vmatprep.mubr.msk.f32.mxu1 %vm412_vm4, %v400_v43  ;;  %v3234_v35 = vpack.c.bf16 %v572_v27, %v555_v26  ;;  %v604_v40 = vld [vmem:[%s5277_s5 + $0x2d0] sm:$0xff]  ;;  %v606_v43 = vld [vmem:[%s5277_s5 + $0x2e0] sm:$0xff]  ;;  %v593_v27 = vld [vmem:[%s5277_s5 + $0x278] sm:$0xff] }
  0xed   : > { %vm394_vm6 = vcmp.ge.f32.partialorder %v384_v42, 0.0  ;;  %v398_v51 = vmul.f32 0.01, %v384_v42  ;;  %3133 = vmatmul.mubr.msk.f32.vlgmr.msra.gmra.mrb[0].mxu1 %vm412_vm4, %v401_v48  ;;  %v605_v48 = vld [vmem:[%s5277_s5 + $0x2d8] sm:$0xff]  ;;  %v608_v26 = vld [vmem:[%s5277_s5 + $0x2f0] sm:$0xff] }
  0xee   : > { %v403_v52 = vsel %vm395_vm5, %v389_v39, %v399_v47  ;;  %3201 = vmatpush1.bf16.msra.mxu1 %v3200_v41  ;;  %v587_v39 = vld [vmem:[%s5277_s5 + $0x248] sm:$0xff]  ;;  %v589_v41 = vld [vmem:[%s5277_s5 + $0x258] sm:$0xff]  ;;  %v588_v47 = vld [vmem:[%s5277_s5 + $0x250] sm:$0xff] }
  0xef   : > { %v402_v54 = vsel %vm394_vm6, %v384_v42, %v398_v51  ;;  %3203 = vmatprep.subr.bf16.mxu1 %v3202_v44  ;;  %v3236_v42 = vpack.c.bf16 %v571_v33, %v554_v32  ;;  %v586_v44 = vld [vmem:[%s5277_s5 + $0x240] sm:$0xff]  ;;  %v3222_v49 = vpack.c.bf16 %v604_v40, %v587_v39  ;;  %v3238_v50 = vpack.c.bf16 %v606_v43, %v589_v41  ;;  %v621_v51 = vld [vmem:[%s5277_s5 + $0x358] sm:$0xff]  ;;  %v607_v32 = vld [vmem:[%s5277_s5 + $0x2e8] sm:$0xff] }
  0xf0   : > { %3135 = vmatprep.mubr.msk.f32.mxu1 %vm412_vm4, %v402_v54  ;;  %v3240_v54 = vpack.c.bf16 %v605_v48, %v588_v47  ;;  %v592_v33 = vld [vmem:[%s5277_s5 + $0x270] sm:$0xff]  ;;  %v625_v39 = vld [vmem:[%s5277_s5 + $0x378] sm:$0xff]  ;;  %v642_v40 = vld [vmem:[%s5277_s5 + $0x400] sm:$0xff] }
  0xf1   : > { %3136 = vmatmul.mubr.msk.f32.gmra.mrb[2].mxu1 %vm412_vm4, %v403_v52  ;;  %v638_v52 = vld [vmem:[%s5277_s5 + $0x3e0] sm:$0xff]  ;;  %v627_v41 = vld [vmem:[%s5277_s5 + $0x388] sm:$0xff]  ;;  %v641_v47 = vld [vmem:[%s5277_s5 + $0x3f8] sm:$0xff] }
  0xf2   : > { %3205 = vmatpush1.bf16.msra.mxu1 %v3204_v53  ;;  %816 = vmatprep.mubr.f32.mxu1 %v3627_v12  ;;  %v3224_v53 = vpack.c.bf16 %v603_v45, %v586_v44  ;;  %v3226_v62 = vpack.c.bf16 %v638_v52, %v621_v51  ;;  %v624_v45 = vld [vmem:[%s5277_s5 + $0x370] sm:$0xff]  ;;  %v626_v48 = vld [vmem:[%s5277_s5 + $0x380] sm:$0xff]  ;;  %v527_v52 = vld [vmem:[%s5277_s5 + $0x68] sm:$0xff] }
  0xf3   : > { %3207 = vmatprep.subr.bf16.mxu1 %v3206_v55  ;;  %v623_v55 = vld [vmem:[%s5277_s5 + $0x368] sm:$0xff]  ;;  %v596_v21 = vld [vmem:[%s5277_s5 + $0x290] sm:$0xff] }
  0xf4   : > { %v3242_v63 = vpack.c.bf16 %v640_v56, %v623_v55  ;;  %v546_v55 = vld [vmem:[%s5277_s5 + $0x100] sm:$0xff]  ;;  %v3260_v56 = vpack.c.bf16 %v641_v47, %v624_v45 }
  0xf6   : > { %3209 = vmatpush1.bf16.msra.mxu1 %v3208_v58  ;;  %v637_v58 = vld [vmem:[%s5277_s5 + $0x3d8] sm:$0xff] }
  0xf7   : > { %3211 = vmatprep.subr.bf16.mxu1 %v3210_v2  ;;  %v542_v2 = vld [vmem:[%s5277_s5 + $0xe0] sm:$0xff]  ;;  %v3228_v3 = vpack.c.bf16 %v637_v58, %v620_v57 }
  0xf8   : > { %v3262_v10 = vpack.c.bf16 %v542_v2, %v525_v1  ;;  %v526_v58 = vld [vmem:[%s5277_s5 + $0x60] sm:$0xff]  ;;  %v563_v2 = vld [vmem:[%s5277_s5 + $0x188] sm:$0xff] }
  0xf9   : > { %v578_v1 = vld [vmem:[%s5277_s5 + $0x200] sm:$0xff] }
  0xfa   : > { %3213 = vmatpush1.bf16.msra.mxu1 %v3212_v6  ;;  %v539_v6 = vld [vmem:[%s5277_s5 + $0xc8] sm:$0xff] }
  0xfb   : > { %3231 = vmatprep.subr.bf16.mxu1 %v3230_v13  ;;  %v574_v13 = vld [vmem:[%s5277_s5 + $0x1e0] sm:$0xff] }
 0x1c0   : > { %v3134_v19 = vpop.f32.mrb[0].mxu1 }
 0x1c1   : > { %v495_v22 = vpop.f32.mrb[1].mxu1  ;;  %v3857_v36 = vadd.f32 %v3134_v19, %v2688_v16  ;;  %v573_v19 = vld [vmem:[%s5277_s5 + $0x1d8] sm:$0xff] }
 0x1c2   : > { %v3831_v24 = vadd.f32 %v2688_v16, %v495_v22  ;;  %v3250_v22 = vpack.c.bf16 %v574_v13, %v557_v11  ;;  %v3252_v29 = vpack.c.bf16 %v573_v19, %v556_v18  ;;  %v595_v13 = vld [vmem:[%s5277_s5 + $0x288] sm:$0xff]  ;;  %v594_v19 = vld [vmem:[%s5277_s5 + $0x280] sm:$0xff] }
 0x1c4   : > { %v3137_v31 = vpop.f32.mrb[2].mxu1  ;;  %1460 = vrot.lane.b32.xlu0 %v3831_v24, %s3628_s8  ;;  %2694 = vmatmul.mubr.msk.f32.vlgmr.msra.gmra.mrb[4].mxu0 %vm650_vm7, %v3831_v24 }
 0x1c5   : > { %2698 = vmatmul.mubr.msk.f32.vlgmr.msra.gmra.mrb[4].mxu1 %vm650_vm7, %v3831_v24  ;;  %v505_v34 = vpop.f32.mrb[3].mxu1  ;;  %3217 = vmatpush1.bf16.msra.mxu0 %v3216_v23  ;;  %v3881_v46 = vadd.f32 %v3137_v31, %v2688_v16  ;;  %v3266_v23 = vpack.c.bf16 %v576_v15, %v559_v14  ;;  %v590_v31 = vld [vmem:[%s5277_s5 + $0x260] sm:$0xff]  ;;  %v612_v14 = vld [vmem:[%s5277_s5 + $0x310] sm:$0xff]  ;;  %v597_v15 = vld [vmem:[%s5277_s5 + $0x298] sm:$0xff] }
 0x1c6   : > { %v3859_v37 = vadd.f32 %v2688_v16, %v505_v34  ;;  %3233 = vmatpush1.bf16.msra.mxu1 %v3232_v25  ;;  %733 = vmatprep.mubr.f32.mxu0 %v3627_v12  ;;  %v3248_v16 = vpack.c.bf16 %v539_v6, %v522_v5  ;;  %v591_v25 = vld [vmem:[%s5277_s5 + $0x268] sm:$0xff]  ;;  %v609_v34 = vld [vmem:[%s5277_s5 + $0x2f8] sm:$0xff]  ;;  %v3256_v43 = vpack.c.bf16 %v607_v32, %v590_v31  ;;  %v560_v6 = vld [vmem:[%s5277_s5 + $0x170] sm:$0xff] }
 0x1c7   : > { %822 = vmatprep.mubr.f32.mxu1 %v3627_v12  ;;  %3219 = vmatprep.subr.bf16.mxu0 %v3218_v28  ;;  %v610_v28 = vld [vmem:[%s5277_s5 + $0x300] sm:$0xff]  ;;  %v3272_v44 = vpack.c.bf16 %v609_v34, %v592_v33  ;;  %v3296_v5 = vpack.c.bf16 %v545_v61, %v528_v60  ;;  %v628_v32 = vld [vmem:[%s5277_s5 + $0x390] sm:$0xff]  ;;  %v645_v33 = vld [vmem:[%s5277_s5 + $0x418] sm:$0xff] }
 0x1c8   : > { %1464 = vrot.lane.b32.xlu1 %v3859_v37, %s3628_s8  ;;  %1462 = vrot.lane.b32.xlu0 %v3857_v36, %s3628_s8  ;;  %v630_v34 = vld [vmem:[%s5277_s5 + $0x3a0] sm:$0xff]  ;;  %v632_v60 = vld [vmem:[%s5277_s5 + $0x3b0] sm:$0xff] }
 0x1c9   : > { %2695 = vmatmul.mubr.msk.f32.gmra.mrb[6].mxu0 %vm650_vm7, %v3857_v36  ;;  %2699 = vmatmul.mubr.msk.f32.gmra.mrb[6].mxu1 %vm650_vm7, %v3857_v36  ;;  %v649_v61 = vld [vmem:[%s5277_s5 + $0x438] sm:$0xff] }
 0x1ca   : > { %3235 = vmatprep.subr.bf16.mxu1 %v3234_v35  ;;  %3221 = vmatpush1.bf16.msra.mxu0 %v3220_v38  ;;  %v3254_v35 = vpack.c.bf16 %v608_v26, %v591_v25  ;;  %v3270_v38 = vpack.c.bf16 %v610_v28, %v593_v27  ;;  %v629_v26 = vld [vmem:[%s5277_s5 + $0x398] sm:$0xff]  ;;  %v646_v27 = vld [vmem:[%s5277_s5 + $0x420] sm:$0xff]  ;;  %v631_v28 = vld [vmem:[%s5277_s5 + $0x3a8] sm:$0xff] }
 0x1cb   : > { %3237 = vmatpush1.bf16.msra.mxu1 %v3236_v42  ;;  %739 = vmatprep.mubr.f32.mxu0 %v3627_v12  ;;  %v644_v42 = vld [vmem:[%s5277_s5 + $0x410] sm:$0xff] }
 0x1cc   : > { %828 = vmatprep.mubr.f32.mxu1 %v3627_v12  ;;  %1466 = vrot.lane.b32.xlu1 %v3881_v46, %s3628_s8  ;;  %v3274_v51 = vpack.c.bf16 %v644_v42, %v627_v41  ;;  %v547_v41 = vld [vmem:[%s5277_s5 + $0x108] sm:$0xff]  ;;  %v1560_v42 = vld [vmem:[%s5278_s6 + $0x80] sm:$0xff] }
 0x1cd   : > { %2696 = vmatmul.mubr.msk.f32.gmra.mrb[8].mxu0 %vm650_vm7, %v3859_v37  ;;  %2700 = vmatmul.mubr.msk.f32.gmra.mrb[8].mxu1 %vm650_vm7, %v3859_v37 }
 0x1ce   : > { %3223 = vmatprep.subr.bf16.mxu0 %v3222_v49  ;;  %3239 = vmatprep.subr.bf16.mxu1 %v3238_v50  ;;  %v643_v49 = vld [vmem:[%s5277_s5 + $0x408] sm:$0xff]  ;;  %v3258_v50 = vpack.c.bf16 %v642_v40, %v625_v39  ;;  %v530_v40 = vld [vmem:[%s5277_s5 + $0x80] sm:$0xff] }
 0x1cf   : > { %3225 = vmatpush1.bf16.msra.mxu0 %v3224_v53  ;;  %3241 = vmatpush1.bf16.msra.mxu1 %v3240_v54  ;;  %v544_v53 = vld [vmem:[%s5277_s5 + $0xf0] sm:$0xff]  ;;  %v529_v54 = vld [vmem:[%s5277_s5 + $0x78] sm:$0xff]  ;;  %v3276_v57 = vpack.c.bf16 %v643_v49, %v626_v48  ;;  %v3310_v47 = vpack.c.bf16 %v547_v41, %v530_v40  ;;  %v1580_v40 = vld [vmem:[%s5278_s6 + $0x120] sm:$0xff] }
 0x1d0   : > { %745 = vmatprep.mubr.f32.mxu0 %v3627_v12  ;;  %834 = vmatprep.mubr.f32.mxu1 %v3627_v12  ;;  %v564_v48 = vld [vmem:[%s5277_s5 + $0x190] sm:$0xff]  ;;  %v581_v49 = vld [vmem:[%s5277_s5 + $0x218] sm:$0xff]  ;;  %v1581_v41 = vld [vmem:[%s5278_s6 + $0x128] sm:$0xff] }
 0x1d1   : > { %2697 = vmatmul.mubr.msk.f32.gmra.mrb[10].mxu0 %vm650_vm7, %v3881_v46  ;;  %2701 = vmatmul.mubr.msk.f32.gmra.mrb[10].mxu1 %vm650_vm7, %v3881_v46 }
 0x1d2   : > { %3227 = vmatprep.subr.bf16.mxu0 %v3226_v62  ;;  %3243 = vmatprep.subr.bf16.mxu1 %v3242_v63  ;;  %v3278_v62 = vpack.c.bf16 %v544_v53, %v527_v52  ;;  %v3294_v63 = vpack.c.bf16 %v546_v55, %v529_v54  ;;  %v1545_v52 = vld [vmem:[%s5278_s6 + $0x8] sm:$0xff]  ;;  %v3314_v53 = vpack.c.bf16 %v581_v49, %v564_v48  ;;  %v598_v54 = vld [vmem:[%s5277_s5 + $0x2a0] sm:$0xff]  ;;  %v1555_v48 = vld [vmem:[%s5278_s6 + $0x58] sm:$0xff] }
 0x1d3   : > { %3229 = vmatpush1.bf16.msra.mxu0 %v3228_v3  ;;  %3245 = vmatpush1.bf16.msra.mxu1 %v3244_v4  ;;  %v580_v3 = vld [vmem:[%s5277_s5 + $0x210] sm:$0xff]  ;;  %v3280_v4 = vpack.c.bf16 %v543_v59, %v526_v58  ;;  %v615_v55 = vld [vmem:[%s5277_s5 + $0x328] sm:$0xff]  ;;  %v1563_v58 = vld [vmem:[%s5278_s6 + $0x98] sm:$0xff]  ;;  %v3368_v49 = vpack.c.bf16 %v1581_v41, %v1580_v40 }
 0x1d4   : > { %905 = vmatprep.mubr.f32.mxu0 %v3627_v12  ;;  %994 = vmatprep.mubr.f32.mxu1 %v3627_v12  ;;  %v3298_v11 = vpack.c.bf16 %v580_v3, %v563_v2  ;;  %v3318_v59 = vpack.c.bf16 %v615_v55, %v598_v54  ;;  %v1592_v2 = vld [vmem:[%s5278_s6 + $0x180] sm:$0xff]  ;;  %v1593_v3 = vld [vmem:[%s5278_s6 + $0x188] sm:$0xff]  ;;  %v1583_v54 = vld [vmem:[%s5278_s6 + $0x138] sm:$0xff] }
 0x1d5   : > { %3247 = vmatprep.subr.bf16.mxu0 %v3246_v9  ;;  %3263 = vmatprep.subr.bf16.mxu1 %v3262_v10  ;;  %v579_v9 = vld [vmem:[%s5277_s5 + $0x208] sm:$0xff]  ;;  %v3282_v10 = vpack.c.bf16 %v578_v1, %v561_v0  ;;  %v1547_v0 = vld [vmem:[%s5278_s6 + $0x18] sm:$0xff]  ;;  %v3322_v1 = vpack.c.bf16 %v649_v61, %v632_v60  ;;  %v1600_v55 = vld [vmem:[%s5278_s6 + $0x1c0] sm:$0xff] }
 0x1d6   : > { %2702 = vmatmul.mubr.msk.f32.vlgmr.msra.gmra.mrb[12].mxu0 %vm650_vm7, %v3831_v24  ;;  %2706 = vmatmul.mubr.msk.f32.vlgmr.msra.gmra.mrb[12].mxu1 %vm650_vm7, %v3831_v24  ;;  %v3300_v18 = vpack.c.bf16 %v579_v9, %v562_v8  ;;  %v1549_v8 = vld [vmem:[%s5278_s6 + $0x28] sm:$0xff]  ;;  %v1566_v9 = vld [vmem:[%s5278_s6 + $0xb0] sm:$0xff] }
 0x1d7   : > { %3249 = vmatpush1.bf16.msra.mxu0 %v3248_v16  ;;  %3265 = vmatpush1.bf16.msra.mxu1 %v3264_v17  ;;  %v614_v16 = vld [vmem:[%s5277_s5 + $0x320] sm:$0xff]  ;;  %v3284_v17 = vpack.c.bf16 %v577_v7, %v560_v6  ;;  %v1565_v6 = vld [vmem:[%s5278_s6 + $0xa8] sm:$0xff] }
 0x1d8   : > { %911 = vmatprep.mubr.f32.mxu0 %v3627_v12  ;;  %1000 = vmatprep.mubr.f32.mxu1 %v3627_v12  ;;  %v3302_v25 = vpack.c.bf16 %v614_v16, %v597_v15  ;;  %v1548_v7 = vld [vmem:[%s5278_s6 + $0x20] sm:$0xff]  ;;  %v1594_v16 = vld [vmem:[%s5278_s6 + $0x190] sm:$0xff]  ;;  %v1557_v60 = vld [vmem:[%s5278_s6 + $0x68] sm:$0xff] }
 0x1d9   : > { %3251 = vmatprep.subr.bf16.mxu0 %v3250_v22  ;;  %3267 = vmatprep.subr.bf16.mxu1 %v3266_v23  ;;  %v613_v22 = vld [vmem:[%s5277_s5 + $0x318] sm:$0xff]  ;;  %v3286_v23 = vpack.c.bf16 %v612_v14, %v595_v13  ;;  %v1576_v13 = vld [vmem:[%s5278_s6 + $0x100] sm:$0xff]  ;;  %v1577_v14 = vld [vmem:[%s5278_s6 + $0x108] sm:$0xff] }
 0x1da   : > { %2703 = vmatmul.mubr.msk.f32.gmra.mrb[14].mxu0 %vm650_vm7, %v3857_v36  ;;  %2707 = vmatmul.mubr.msk.f32.gmra.mrb[14].mxu1 %vm650_vm7, %v3857_v36  ;;  %v3304_v31 = vpack.c.bf16 %v613_v22, %v596_v21  ;;  %v3360_v21 = vpack.c.bf16 %v1577_v14, %v1576_v13  ;;  %v1568_v22 = vld [vmem:[%s5278_s6 + $0xc0] sm:$0xff]  ;;  %v1641_v41 = vld [vmem:[%s5278_s6 + $0x308] sm:$0xff] }
 0x1db   : > { %3253 = vmatpush1.bf16.msra.mxu0 %v3252_v29  ;;  %3269 = vmatpush1.bf16.msra.mxu1 %v3268_v30  ;;  %v648_v29 = vld [vmem:[%s5277_s5 + $0x430] sm:$0xff]  ;;  %v3288_v30 = vpack.c.bf16 %v611_v20, %v594_v19  ;;  %v1551_v20 = vld [vmem:[%s5278_s6 + $0x38] sm:$0xff] }
 0x1dc   : > { %917 = vmatprep.mubr.f32.mxu0 %v3627_v12  ;;  %1006 = vmatprep.mubr.f32.mxu1 %v3627_v12  ;;  %v3306_v39 = vpack.c.bf16 %v648_v29, %v631_v28  ;;  %v1550_v19 = vld [vmem:[%s5278_s6 + $0x30] sm:$0xff]  ;;  %v1596_v28 = vld [vmem:[%s5278_s6 + $0x1a0] sm:$0xff]  ;;  %v1597_v29 = vld [vmem:[%s5278_s6 + $0x1a8] sm:$0xff] }
 0x1dd   : > { %3255 = vmatprep.subr.bf16.mxu0 %v3254_v35  ;;  %3271 = vmatprep.subr.bf16.mxu1 %v3270_v38  ;;  %v647_v35 = vld [vmem:[%s5277_s5 + $0x428] sm:$0xff]  ;;  %v3290_v38 = vpack.c.bf16 %v646_v27, %v629_v26  ;;  %v1578_v26 = vld [vmem:[%s5278_s6 + $0x110] sm:$0xff]  ;;  %v1579_v27 = vld [vmem:[%s5278_s6 + $0x118] sm:$0xff] }
 0x1de   : > { %2704 = vmatmul.mubr.msk.f32.gmra.mrb[16].mxu0 %vm650_vm7, %v3859_v37  ;;  %2708 = vmatmul.mubr.msk.f32.gmra.mrb[16].mxu1 %vm650_vm7, %v3859_v37  ;;  %v3308_v45 = vpack.c.bf16 %v647_v35, %v630_v34  ;;  %v3364_v34 = vpack.c.bf16 %v1579_v27, %v1578_v26  ;;  %v1570_v35 = vld [vmem:[%s5278_s6 + $0xd0] sm:$0xff] }
 0x1df   : > { %3257 = vmatpush1.bf16.msra.mxu0 %v3256_v43  ;;  %3273 = vmatpush1.bf16.msra.mxu1 %v3272_v44  ;;  %v1561_v43 = vld [vmem:[%s5278_s6 + $0x88] sm:$0xff]  ;;  %v3292_v44 = vpack.c.bf16 %v645_v33, %v628_v32  ;;  %v1552_v32 = vld [vmem:[%s5278_s6 + $0x40] sm:$0xff] }
 0x1e0   : > { %923 = vmatprep.mubr.f32.mxu0 %v3627_v12  ;;  %1012 = vmatprep.mubr.f32.mxu1 %v3627_v12  ;;  %v1553_v33 = vld [vmem:[%s5278_s6 + $0x48] sm:$0xff] }
 0x1e1   : > { %3259 = vmatprep.subr.bf16.mxu0 %v3258_v50  ;;  %3275 = vmatprep.subr.bf16.mxu1 %v3274_v51  ;;  %v3326_v50 = vpack.c.bf16 %v1561_v43, %v1560_v42  ;;  %v1544_v51 = vld [vmem:[%s5278_s6] sm:$0xff]  ;;  %v1598_v42 = vld [vmem:[%s5278_s6 + $0x1b0] sm:$0xff]  ;;  %v1599_v43 = vld [vmem:[%s5278_s6 + $0x1b8] sm:$0xff] }
 0x1e2   : > { %2705 = vmatmul.mubr.msk.f32.gmra.mrb[18].mxu0 %vm650_vm7, %v3881_v46  ;;  %2709 = vmatmul.mubr.msk.f32.gmra.mrb[18].mxu1 %vm650_vm7, %v3881_v46 }
 0x1e3   : > { %3261 = vmatpush1.bf16.msra.mxu0 %v3260_v56  ;;  %3277 = vmatpush1.bf16.msra.mxu1 %v3276_v57  ;;  %v3328_v56 = vpack.c.bf16 %v1545_v52, %v1544_v51  ;;  %v1562_v57 = vld [vmem:[%s5278_s6 + $0x90] sm:$0xff]  ;;  %v1573_v51 = vld [vmem:[%s5278_s6 + $0xe8] sm:$0xff]  ;;  %v3370_v52 = vpack.c.bf16 %v1599_v43, %v1598_v42  ;;  %v1627_v43 = vld [vmem:[%s5278_s6 + $0x298] sm:$0xff] }
 0x1e4   : > { %1083 = vmatprep.mubr.f32.mxu0 %v3627_v12  ;;  %1172 = vmatprep.mubr.f32.mxu1 %v3627_v12  ;;  %v1626_v42 = vld [vmem:[%s5278_s6 + $0x290] sm:$0xff] }
 0x1e5   : > { %3279 = vmatprep.subr.bf16.mxu0 %v3278_v62  ;;  %3295 = vmatprep.subr.bf16.mxu1 %v3294_v63  ;;  %v3330_v62 = vpack.c.bf16 %v1563_v58, %v1562_v57  ;;  %v1546_v63 = vld [vmem:[%s5278_s6 + $0x10] sm:$0xff] }
 0x1e6   : > { %2710 = vmatmul.mubr.msk.f32.vlgmr.msra.gmra.mrb[20].mxu0 %vm650_vm7, %v3831_v24  ;;  %2714 = vmatmul.mubr.msk.f32.vlgmr.msra.gmra.mrb[20].mxu1 %vm650_vm7, %v3831_v24 }
 0x1e7   : > { %3281 = vmatpush1.bf16.msra.mxu0 %v3280_v4  ;;  %3297 = vmatpush1.bf16.msra.mxu1 %v3296_v5  ;;  %v3332_v4 = vpack.c.bf16 %v1547_v0, %v1546_v63  ;;  %v1564_v5 = vld [vmem:[%s5278_s6 + $0xa0] sm:$0xff]  ;;  %v1585_v0 = vld [vmem:[%s5278_s6 + $0x148] sm:$0xff] }
 0x1e8   : > { %1089 = vmatprep.mubr.f32.mxu0 %v3627_v12  ;;  %1178 = vmatprep.mubr.f32.mxu1 %v3627_v12  ;;  %v3334_v15 = vpack.c.bf16 %v1565_v6, %v1564_v5  ;;  %v1584_v63 = vld [vmem:[%s5278_s6 + $0x140] sm:$0xff]  ;;  %v1586_v6 = vld [vmem:[%s5278_s6 + $0x150] sm:$0xff] }
 0x1e9   : > { %3283 = vmatprep.subr.bf16.mxu0 %v3282_v10  ;;  %3299 = vmatprep.subr.bf16.mxu1 %v3298_v11  ;;  %v1567_v10 = vld [vmem:[%s5278_s6 + $0xb8] sm:$0xff]  ;;  %v3358_v11 = vpack.c.bf16 %v1593_v3, %v1592_v2 }
 0x1ea   : > { %2711 = vmatmul.mubr.msk.f32.gmra.mrb[22].mxu0 %vm650_vm7, %v3857_v36  ;;  %2715 = vmatmul.mubr.msk.f32.gmra.mrb[22].mxu1 %vm650_vm7, %v3857_v36  ;;  %v1603_v2 = vld [vmem:[%s5278_s6 + $0x1d8] sm:$0xff] }
 0x1eb   : > { %3285 = vmatpush1.bf16.msra.mxu0 %v3284_v17  ;;  %3301 = vmatpush1.bf16.msra.mxu1 %v3300_v18  ;;  %v1595_v17 = vld [vmem:[%s5278_s6 + $0x198] sm:$0xff]  ;;  %v3338_v18 = vpack.c.bf16 %v1567_v10, %v1566_v9  ;;  %v1605_v9 = vld [vmem:[%s5278_s6 + $0x1e8] sm:$0xff]  ;;  %v1574_v10 = vld [vmem:[%s5278_s6 + $0xf0] sm:$0xff] }
 0x1ec   : > { %1095 = vmatprep.mubr.f32.mxu0 %v3627_v12  ;;  %1184 = vmatprep.mubr.f32.mxu1 %v3627_v12 }
 0x1ed   : > { %3287 = vmatprep.subr.bf16.mxu0 %v3286_v23  ;;  %3303 = vmatprep.subr.bf16.mxu1 %v3302_v25  ;;  %v1569_v23 = vld [vmem:[%s5278_s6 + $0xc8] sm:$0xff]  ;;  %v3362_v25 = vpack.c.bf16 %v1595_v17, %v1594_v16  ;;  %v1559_v16 = vld [vmem:[%s5278_s6 + $0x78] sm:$0xff] }
 0x1ee   : > { %2712 = vmatmul.mubr.msk.f32.gmra.mrb[24].mxu0 %vm650_vm7, %v3859_v37  ;;  %2716 = vmatmul.mubr.msk.f32.gmra.mrb[24].mxu1 %vm650_vm7, %v3859_v37 }
 0x1ef   : > { %3289 = vmatpush1.bf16.msra.mxu0 %v3288_v30  ;;  %3305 = vmatpush1.bf16.msra.mxu1 %v3304_v31  ;;  %v3340_v30 = vpack.c.bf16 %v1551_v20, %v1550_v19  ;;  %v3342_v31 = vpack.c.bf16 %v1569_v23, %v1568_v22  ;;  %v1606_v20 = vld [vmem:[%s5278_s6 + $0x1f0] sm:$0xff]  ;;  %v1624_v22 = vld [vmem:[%s5278_s6 + $0x280] sm:$0xff]  ;;  %v1625_v23 = vld [vmem:[%s5278_s6 + $0x288] sm:$0xff] }
 0x1f0   : > { %1101 = vmatprep.mubr.f32.mxu0 %v3627_v12  ;;  %1190 = vmatprep.mubr.f32.mxu1 %v3627_v12  ;;  %v3390_v26 = vpack.c.bf16 %v1625_v23, %v1624_v22  ;;  %v1630_v22 = vld [vmem:[%s5278_s6 + $0x2b0] sm:$0xff]  ;;  %v1631_v23 = vld [vmem:[%s5278_s6 + $0x2b8] sm:$0xff] }
 0x1f1   : > { %3291 = vmatprep.subr.bf16.mxu0 %v3290_v38  ;;  %3307 = vmatprep.subr.bf16.mxu1 %v3306_v39  ;;  %v1571_v38 = vld [vmem:[%s5278_s6 + $0xd8] sm:$0xff]  ;;  %v3366_v39 = vpack.c.bf16 %v1597_v29, %v1596_v28  ;;  %v1590_v28 = vld [vmem:[%s5278_s6 + $0x170] sm:$0xff] }
 0x1f2   : > { %2713 = vmatmul.mubr.msk.f32.gmra.mrb[26].mxu0 %vm650_vm7, %v3881_v46  ;;  %2717 = vmatmul.mubr.msk.f32.gmra.mrb[26].mxu1 %vm650_vm7, %v3881_v46  ;;  %v1591_v29 = vld [vmem:[%s5278_s6 + $0x178] sm:$0xff] }
 0x1f3   : > { %3293 = vmatpush1.bf16.msra.mxu0 %v3292_v44  ;;  %3309 = vmatpush1.bf16.msra.mxu1 %v3308_v45  ;;  %v3344_v44 = vpack.c.bf16 %v1553_v33, %v1552_v32  ;;  %v3346_v45 = vpack.c.bf16 %v1571_v38, %v1570_v35  ;;  %v3388_v32 = vpack.c.bf16 %v1591_v29, %v1590_v28  ;;  %v1608_v35 = vld [vmem:[%s5278_s6 + $0x200] sm:$0xff]  ;;  %v1609_v38 = vld [vmem:[%s5278_s6 + $0x208] sm:$0xff]  ;;  %v1663_v28 = vld [vmem:[%s5278_s6 + $0x3b8] sm:$0xff] }
 0x1f4   : > { %1261 = vmatprep.mubr.f32.mxu0 %v3627_v12  ;;  %1350 = vmatprep.mubr.f32.mxu1 %v3627_v12 }
 0x1f5   : > { %3311 = vmatprep.subr.bf16.mxu0 %v3310_v47  ;;  %3327 = vmatprep.subr.bf16.mxu1 %v3326_v50  ;;  %v1572_v50 = vld [vmem:[%s5278_s6 + $0xe0] sm:$0xff] }
 0x1f6   : > { %2718 = vmatmul.mubr.msk.f32.vlgmr.msra.gmra.mrb[28].mxu0 %vm650_vm7, %v3831_v24  ;;  %2722 = vmatmul.mubr.msk.f32.vlgmr.msra.gmra.mrb[28].mxu1 %vm650_vm7, %v3831_v24  ;;  %v3350_v58 = vpack.c.bf16 %v1573_v51, %v1572_v50 }
 0x1f7   : > { %3313 = vmatpush3.bf16.msra.mxu0 %v3310_v47  ;;  %1267 = vmatprep.mubr.f32.mxu0 %v3627_v12  ;;  %v1554_v47 = vld [vmem:[%s5278_s6 + $0x50] sm:$0xff] }
 0x1f8   : > { %1356 = vmatprep.mubr.f32.mxu1 %v3627_v12  ;;  %3315 = vmatprep.subr.bf16.mxu0 %v3314_v53  ;;  %v3348_v57 = vpack.c.bf16 %v1555_v48, %v1554_v47  ;;  %v1658_v48 = vld [vmem:[%s5278_s6 + $0x390] sm:$0xff] }
 0x1f9   : > { %3329 = vmatpush3.bf16.msra.mxu1 %v3328_v56  ;;  %v1601_v56 = vld [vmem:[%s5278_s6 + $0x1c8] sm:$0xff] }
 0x1fa   : > { %2719 = vmatmul.mubr.msk.f32.gmra.mrb[30].mxu0 %vm650_vm7, %v3857_v36  ;;  %2723 = vmatmul.mubr.msk.f32.gmra.mrb[30].mxu1 %vm650_vm7, %v3857_v36 }
 0x1fb   : > { %3317 = vmatpush3.bf16.msra.mxu0 %v3314_v53  ;;  %1273 = vmatprep.mubr.f32.mxu0 %v3627_v12  ;;  %v1582_v53 = vld [vmem:[%s5278_s6 + $0x130] sm:$0xff] }
 0x1fc   : > { %1362 = vmatprep.mubr.f32.mxu1 %v3627_v12  ;;  %3319 = vmatprep.subr.bf16.mxu0 %v3318_v59  ;;  %v3372_v61 = vpack.c.bf16 %v1583_v54, %v1582_v53 }
 0x1fd   : > { %3331 = vmatprep.subr.bf16.mxu1 %v3330_v62  ;;  %v3374_v62 = vpack.c.bf16 %v1601_v56, %v1600_v55 }
 0x1fe   : > { %2720 = vmatmul.mubr.msk.f32.gmra.mrb[32].mxu0 %vm650_vm7, %v3859_v37  ;;  %2724 = vmatmul.mubr.msk.f32.gmra.mrb[32].mxu1 %vm650_vm7, %v3859_v37 }
 0x1ff   : > { %3321 = vmatpush3.bf16.msra.mxu0 %v3318_v59  ;;  %1279 = vmatprep.mubr.f32.mxu0 %v3627_v12  ;;  %v1556_v59 = vld [vmem:[%s5278_s6 + $0x60] sm:$0xff] }
 0x200   : > { %1368 = vmatprep.mubr.f32.mxu1 %v3627_v12  ;;  %3323 = vmatprep.subr.bf16.mxu0 %v3322_v1  ;;  %v3336_v12 = vpack.c.bf16 %v1549_v8, %v1548_v7  ;;  %v3352_v3 = vpack.c.bf16 %v1557_v60, %v1556_v59  ;;  %v1587_v7 = vld [vmem:[%s5278_s6 + $0x158] sm:$0xff]  ;;  %v1604_v8 = vld [vmem:[%s5278_s6 + $0x1e0] sm:$0xff] }
 0x201   : > { %3333 = vmatpush3.bf16.msra.mxu1 %v3332_v4  ;;  %v3376_v4 = vpack.c.bf16 %v1585_v0, %v1584_v63  ;;  %v3380_v13 = vpack.c.bf16 %v1587_v7, %v1586_v6  ;;  %v3382_v17 = vpack.c.bf16 %v1605_v9, %v1604_v8  ;;  %v1611_v59 = vld [vmem:[%s5278_s6 + $0x218] sm:$0xff]  ;;  %v1642_v63 = vld [vmem:[%s5278_s6 + $0x310] sm:$0xff]  ;;  %v1661_v6 = vld [vmem:[%s5278_s6 + $0x3a8] sm:$0xff] }
 0x202   : > { %2721 = vmatmul.mubr.msk.f32.gmra.mrb[34].mxu0 %vm650_vm7, %v3881_v46  ;;  %2725 = vmatmul.mubr.msk.f32.gmra.mrb[34].mxu1 %vm650_vm7, %v3881_v46  ;;  %v1643_v0 = vld [vmem:[%s5278_s6 + $0x318] sm:$0xff] }
 0x203   : > { %3325 = vmatpush3.bf16.msra.mxu0 %v3322_v1  ;;  %3154 = vmatprep.mubr.msk.f32.mxu0 %vm650_vm7, %v3831_v24  ;;  %v1602_v1 = vld [vmem:[%s5278_s6 + $0x1d0] sm:$0xff] }
 0x204   : > { %3359 = vmatprep.subr.bf16.mxu0 %v3358_v11  ;;  %3335 = vmatprep.subr.bf16.mxu1 %v3334_v15  ;;  %v3378_v5 = vpack.c.bf16 %v1603_v2, %v1602_v1  ;;  %v1575_v11 = vld [vmem:[%s5278_s6 + $0xf8] sm:$0xff]  ;;  %v1558_v15 = vld [vmem:[%s5278_s6 + $0x70] sm:$0xff]  ;;  %v1628_v1 = vld [vmem:[%s5278_s6 + $0x2a0] sm:$0xff] }
 0x205   : > { %3337 = vmatpush3.bf16.msra.mxu1 %v3336_v12  ;;  %v3354_v14 = vpack.c.bf16 %v1575_v11, %v1574_v10  ;;  %v1588_v12 = vld [vmem:[%s5278_s6 + $0x160] sm:$0xff]  ;;  %v3356_v19 = vpack.c.bf16 %v1559_v16, %v1558_v15  ;;  %v3428_v15 = vpack.c.bf16 %v1643_v0, %v1642_v63  ;;  %v1613_v16 = vld [vmem:[%s5278_s6 + $0x228] sm:$0xff] }
 0x206   : > { %3155 = vmatmul.mubr.msk.f32.vlgmr.msra.gmra.mrb[36].mxu0 %vm650_vm7, %v3857_v36  ;;  %3339 = vmatprep.subr.bf16.mxu1 %v3338_v18  ;;  %v1589_v18 = vld [vmem:[%s5278_s6 + $0x168] sm:$0xff]  ;;  %v1612_v11 = vld [vmem:[%s5278_s6 + $0x220] sm:$0xff] }
 0x207   : > { %3157 = vmatprep.mubr.msk.f32.mxu0 %vm650_vm7, %v3859_v37  ;;  %3361 = vmatpush3.bf16.msra.mxu0 %v3360_v21  ;;  %v1607_v21 = vld [vmem:[%s5278_s6 + $0x1f8] sm:$0xff]  ;;  %v1616_v63 = vld [vmem:[%s5278_s6 + $0x240] sm:$0xff]  ;;  %v1617_v0 = vld [vmem:[%s5278_s6 + $0x248] sm:$0xff] }
 0x208   : > { %3363 = vmatprep.subr.bf16.mxu0 %v3362_v25  ;;  %v3384_v25 = vpack.c.bf16 %v1589_v18, %v1588_v12  ;;  %v3386_v27 = vpack.c.bf16 %v1607_v21, %v1606_v20  ;;  %v1645_v12 = vld [vmem:[%s5278_s6 + $0x328] sm:$0xff] }
 0x209   : > { %3341 = vmatpush3.bf16.msra.mxu1 %v3340_v30  ;;  %v1656_v30 = vld [vmem:[%s5278_s6 + $0x380] sm:$0xff] }
 0x20a   : > { %3158 = vmatmul.mubr.msk.f32.gmra.mrb[38].mxu0 %vm650_vm7, %v3881_v46  ;;  %3343 = vmatprep.subr.bf16.mxu1 %v3342_v31  ;;  %v1657_v31 = vld [vmem:[%s5278_s6 + $0x388] sm:$0xff] }
 0x20b   : > { %3365 = vmatpush3.bf16.msra.mxu0 %v3364_v34  ;;  %v3422_v33 = vpack.c.bf16 %v1657_v31, %v1656_v30 }
 0x20c   : > { %3367 = vmatprep.subr.bf16.mxu0 %v3366_v39  ;;  %v1640_v39 = vld [vmem:[%s5278_s6 + $0x300] sm:$0xff] }
 0x20d   : > { %3345 = vmatpush3.bf16.msra.mxu1 %v3344_v44  ;;  %v3424_v56 = vpack.c.bf16 %v1641_v41, %v1640_v39  ;;  %v1615_v41 = vld [vmem:[%s5278_s6 + $0x238] sm:$0xff] }
 0x20e   : > { %3347 = vmatprep.subr.bf16.mxu1 %v3346_v45 }
 0x20f   : > { %3369 = vmatpush3.bf16.msra.mxu0 %v3368_v49  ;;  %v1659_v49 = vld [vmem:[%s5278_s6 + $0x398] sm:$0xff] }
 0x210   : > { %3371 = vmatprep.subr.bf16.mxu0 %v3370_v52  ;;  %v3392_v52 = vpack.c.bf16 %v1609_v38, %v1608_v35 }
 0x211   : > { %3349 = vmatpush3.bf16.msra.mxu1 %v3348_v57  ;;  %v3394_v57 = vpack.c.bf16 %v1627_v43, %v1626_v42  ;;  %v1646_v42 = vld [vmem:[%s5278_s6 + $0x330] sm:$0xff]  ;;  %v1647_v43 = vld [vmem:[%s5278_s6 + $0x338] sm:$0xff] }
 0x212   : > { %3351 = vmatprep.subr.bf16.mxu1 %v3350_v58  ;;  %v1610_v58 = vld [vmem:[%s5278_s6 + $0x210] sm:$0xff] }
 0x213   : > { %3373 = vmatpush3.bf16.msra.mxu0 %v3372_v61  ;;  %v3396_v10 = vpack.c.bf16 %v1611_v59, %v1610_v58  ;;  %v3436_v59 = vpack.c.bf16 %v1647_v43, %v1646_v42  ;;  %v1652_v43 = vld [vmem:[%s5278_s6 + $0x360] sm:$0xff] }
 0x214   : > { %3375 = vmatprep.subr.bf16.mxu0 %v3374_v62  ;;  %v3426_v62 = vpack.c.bf16 %v1659_v49, %v1658_v48  ;;  %v1632_v49 = vld [vmem:[%s5278_s6 + $0x2c0] sm:$0xff] }
 0x215   : > { %3353 = vmatpush3.bf16.msra.mxu1 %v3352_v3 }
 0x216   : > { %3355 = vmatprep.subr.bf16.mxu1 %v3354_v14 }
 0x217   : > { %3377 = vmatpush3.bf16.msra.mxu0 %v3376_v4  ;;  %v1629_v4 = vld [vmem:[%s5278_s6 + $0x2a8] sm:$0xff] }
 0x218   : > { %3379 = vmatprep.subr.bf16.mxu0 %v3378_v5  ;;  %v1660_v5 = vld [vmem:[%s5278_s6 + $0x3a0] sm:$0xff]  ;;  %v3398_v20 = vpack.c.bf16 %v1629_v4, %v1628_v1 }
 0x219   : > { %3357 = vmatpush3.bf16.msra.mxu1 %v3356_v19  ;;  %v3430_v21 = vpack.c.bf16 %v1661_v6, %v1660_v5  ;;  %v1648_v1 = vld [vmem:[%s5278_s6 + $0x340] sm:$0xff]  ;;  %v1649_v5 = vld [vmem:[%s5278_s6 + $0x348] sm:$0xff]  ;;  %v1634_v6 = vld [vmem:[%s5278_s6 + $0x2d0] sm:$0xff] }
 0x21a   : > { %3391 = vmatprep.subr.bf16.mxu1 %v3390_v26 }
 0x21b   : > { %3381 = vmatpush3.bf16.msra.mxu0 %v3380_v13 }
 0x21c   : > { %3383 = vmatprep.subr.bf16.mxu0 %v3382_v17  ;;  %v1644_v17 = vld [vmem:[%s5278_s6 + $0x320] sm:$0xff] }
 0x21f   : > { %3385 = vmatpush3.bf16.msra.mxu0 %v3384_v25 }
 0x220   : > { %3387 = vmatprep.subr.bf16.mxu0 %v3386_v27  ;;  %v1662_v27 = vld [vmem:[%s5278_s6 + $0x3b0] sm:$0xff] }
 0x221   : > { %v3434_v48 = vpack.c.bf16 %v1663_v28, %v1662_v27  ;;  %v1637_v27 = vld [vmem:[%s5278_s6 + $0x2e8] sm:$0xff]  ;;  %v1668_v28 = vld [vmem:[%s5278_s6 + $0x3e0] sm:$0xff] }
 0x223   : > { %3389 = vmatpush3.bf16.msra.mxu0 %v3388_v32  ;;  %v3400_v32 = vpack.c.bf16 %v1613_v16, %v1612_v11  ;;  %v3408_v16 = vpack.c.bf16 %v1617_v0, %v1616_v63  ;;  %v1655_v63 = vld [vmem:[%s5278_s6 + $0x378] sm:$0xff]  ;;  %v1688_v0 = vld [vmem:[%s5278_s6 + $0x480] sm:$0xff] }
 0x224   : > { %3423 = vmatprep.subr.bf16.mxu0 %v3422_v33  ;;  %v3432_v33 = vpack.c.bf16 %v1645_v12, %v1644_v17  ;;  %v3440_v17 = vpack.c.bf16 %v1649_v5, %v1648_v1  ;;  %v1689_v1 = vld [vmem:[%s5278_s6 + $0x488] sm:$0xff] }
 0x236   : > { %v1461_v34 = vpop.permute.xlu0 %1460 }
 0x237   : > { %v4455_v44 = vsel %vm650_vm7, %v3831_v24, %v1461_v34  ;;  %v1614_v34 = vld [vmem:[%s5278_s6 + $0x230] sm:$0xff] }
 0x238   : > { %v3404_v58 = vpack.c.bf16 %v1615_v41, %v1614_v34 }
 0x23a   : > { %v1463_v53 = vpop.permute.xlu0 %1462  ;;  %v1465_v60 = vpop.permute.xlu1 %1464 }
 0x23b   : > { %v4493_v7 = vsel %vm650_vm7, %v3857_v36, %v1463_v53  ;;  %v4525_v29 = vsel %vm650_vm7, %v3859_v37, %v1465_v60  ;;  %v1664_v53 = vld [vmem:[%s5278_s6 + $0x3c0] sm:$0xff] }
 0x23e   : > { %v1467_v35 = vpop.permute.xlu1 %1466 }
 0x297   : > { %v729_v40 = vpop.f32.mrb[4].mxu0 }
 0x298   : > { %v818_v45 = vpop.f32.mrb[4].mxu1  ;;  %v731_v47 = vpop.f32.mrb[5].mxu0  ;;  %v1476_v54 = vmul.f32 %v4455_v44, %v729_v40  ;;  %v3402_v40 = vpack.c.bf16 %v1631_v23, %v1630_v22  ;;  %v1650_v23 = vld [vmem:[%s5278_s6 + $0x350] sm:$0xff] }
 0x299   : > { %v1477_v50 = vmul.f32 %v4455_v44, %v731_v47  ;;  %v820_v51 = vpop.f32.mrb[5].mxu1  ;;  %v1478_v61 = vmul.f32 %v4455_v44, %v818_v45 }
 0x29a   : > { %v1479_v55 = vmul.f32 %v4455_v44, %v820_v51 }
 0x29b   : > { %1884 = vmatprep.mubr.f32.mxu1 %v1477_v50  ;;  %v1633_v50 = vld [vmem:[%s5278_s6 + $0x2c8] sm:$0xff] }
 0x29c   : > { %v735_v2 = vpop.f32.mrb[6].mxu0  ;;  %v824_v3 = vpop.f32.mrb[6].mxu1  ;;  %1969 = vmatprep.mubr.f32.mxu0 %v1479_v55  ;;  %1885 = vmatmul.mubr.f32.vlgmr.msra.gmra.mrb[36].mxu1 %v1476_v54  ;;  %v1665_v54 = vld [vmem:[%s5278_s6 + $0x3c8] sm:$0xff]  ;;  %v4557_v55 = vsel %vm650_vm7, %v3881_v46, %v1467_v35 }
 0x29d   : > { %v737_v8 = vpop.f32.mrb[7].mxu0  ;;  %v826_v9 = vpop.f32.mrb[7].mxu1  ;;  %1970 = vmatmul.mubr.f32.vlgmr.msra.gmra.mrb[40].mxu0 %v1478_v61  ;;  %3393 = vmatpush3.bf16.msra.mxu1 %v3392_v52  ;;  %v1493_v18 = vmul.f32 %v4493_v7, %v735_v2  ;;  %v1495_v19 = vmul.f32 %v4493_v7, %v824_v3  ;;  %v3438_v4 = vpack.c.bf16 %v1665_v54, %v1664_v53 }
 0x29e   : > { %v1494_v13 = vmul.f32 %v4493_v7, %v737_v8  ;;  %v1496_v14 = vmul.f32 %v4493_v7, %v826_v9  ;;  %3425 = vmatpush3.bf16.msra.mxu0 %v3424_v56  ;;  %3395 = vmatprep.subr.bf16.mxu1 %v3394_v57  ;;  %v1635_v8 = vld [vmem:[%s5278_s6 + $0x2d8] sm:$0xff]  ;;  %v1666_v9 = vld [vmem:[%s5278_s6 + $0x3d0] sm:$0xff] }
 0x29f   : > { %3427 = vmatprep.subr.bf16.mxu0 %v3426_v62  ;;  %v3406_v62 = vpack.c.bf16 %v1633_v50, %v1632_v49  ;;  %v3410_v12 = vpack.c.bf16 %v1635_v8, %v1634_v6  ;;  %v1670_v49 = vld [vmem:[%s5278_s6 + $0x3f0] sm:$0xff]  ;;  %v1671_v50 = vld [vmem:[%s5278_s6 + $0x3f8] sm:$0xff] }
 0x2a0   : > { %v741_v25 = vpop.f32.mrb[8].mxu0  ;;  %v830_v26 = vpop.f32.mrb[8].mxu1  ;;  %1889 = vmatprep.mubr.f32.mxu1 %v1494_v13  ;;  %1974 = vmatprep.mubr.f32.mxu0 %v1496_v14 }
 0x2a1   : > { %v743_v30 = vpop.f32.mrb[9].mxu0  ;;  %v832_v31 = vpop.f32.mrb[9].mxu1  ;;  %1890 = vmatmul.mubr.f32.gmra.mrb[38].mxu1 %v1493_v18  ;;  %1975 = vmatmul.mubr.f32.gmra.mrb[42].mxu0 %v1495_v19  ;;  %v1510_v45 = vmul.f32 %v4525_v29, %v741_v25  ;;  %v1512_v47 = vmul.f32 %v4525_v29, %v830_v26  ;;  %v1618_v18 = vld [vmem:[%s5278_s6 + $0x250] sm:$0xff]  ;;  %v1619_v19 = vld [vmem:[%s5278_s6 + $0x258] sm:$0xff]  ;;  %v1636_v26 = vld [vmem:[%s5278_s6 + $0x2e0] sm:$0xff] }
 0x2a2   : > { %v1511_v38 = vmul.f32 %v4525_v29, %v743_v30  ;;  %v1513_v39 = vmul.f32 %v4525_v29, %v832_v31  ;;  %3397 = vmatpush3.bf16.msra.mxu1 %v3396_v10  ;;  %3429 = vmatpush3.bf16.msra.mxu0 %v3428_v15  ;;  %v1667_v10 = vld [vmem:[%s5278_s6 + $0x3d8] sm:$0xff]  ;;  %v1669_v30 = vld [vmem:[%s5278_s6 + $0x3e8] sm:$0xff]  ;;  %v3412_v35 = vpack.c.bf16 %v1619_v19, %v1618_v18  ;;  %v1690_v19 = vld [vmem:[%s5278_s6 + $0x490] sm:$0xff] }
 0x2a3   : > { %3399 = vmatprep.subr.bf16.mxu1 %v3398_v20  ;;  %3431 = vmatprep.subr.bf16.mxu0 %v3430_v21  ;;  %v3442_v22 = vpack.c.bf16 %v1667_v10, %v1666_v9  ;;  %v1651_v25 = vld [vmem:[%s5278_s6 + $0x358] sm:$0xff]  ;;  %v3414_v41 = vpack.c.bf16 %v1637_v27, %v1636_v26  ;;  %v3446_v42 = vpack.c.bf16 %v1669_v30, %v1668_v28  ;;  %v1705_v18 = vld [vmem:[%s5278_s6 + $0x508] sm:$0xff] }
 0x2a4   : > { %v747_v51 = vpop.f32.mrb[10].mxu0  ;;  %v836_v52 = vpop.f32.mrb[10].mxu1  ;;  %1894 = vmatprep.mubr.f32.mxu1 %v1511_v38  ;;  %1979 = vmatprep.mubr.f32.mxu0 %v1513_v39  ;;  %v3444_v38 = vpack.c.bf16 %v1651_v25, %v1650_v23  ;;  %v1620_v39 = vld [vmem:[%s5278_s6 + $0x260] sm:$0xff]  ;;  %v1722_v23 = vld [vmem:[%s5278_s6 + $0x590] sm:$0xff]  ;;  %v1723_v25 = vld [vmem:[%s5278_s6 + $0x598] sm:$0xff] }
 0x2a5   : > { %v749_v56 = vpop.f32.mrb[11].mxu0  ;;  %v838_v57 = vpop.f32.mrb[11].mxu1  ;;  %1895 = vmatmul.mubr.f32.gmra.mrb[40].mxu1 %v1510_v45  ;;  %1980 = vmatmul.mubr.f32.gmra.mrb[44].mxu0 %v1512_v47  ;;  %v1527_v2 = vmul.f32 %v4557_v55, %v747_v51  ;;  %v1529_v3 = vmul.f32 %v4557_v55, %v836_v52  ;;  %v1653_v45 = vld [vmem:[%s5278_s6 + $0x368] sm:$0xff]  ;;  %v1638_v47 = vld [vmem:[%s5278_s6 + $0x2f0] sm:$0xff] }
 0x2a6   : > { %v1528_v60 = vmul.f32 %v4557_v55, %v749_v56  ;;  %v1530_v61 = vmul.f32 %v4557_v55, %v838_v57  ;;  %3401 = vmatpush3.bf16.msra.mxu1 %v3400_v32  ;;  %3433 = vmatpush3.bf16.msra.mxu0 %v3432_v33  ;;  %v3448_v57 = vpack.c.bf16 %v1653_v45, %v1652_v43  ;;  %v1706_v43 = vld [vmem:[%s5278_s6 + $0x510] sm:$0xff]  ;;  %v1707_v45 = vld [vmem:[%s5278_s6 + $0x518] sm:$0xff] }
 0x2a7   : > { %3403 = vmatprep.subr.bf16.mxu1 %v3402_v40  ;;  %3435 = vmatprep.subr.bf16.mxu0 %v3434_v48  ;;  %v1621_v40 = vld [vmem:[%s5278_s6 + $0x268] sm:$0xff]  ;;  %v1639_v48 = vld [vmem:[%s5278_s6 + $0x2f8] sm:$0xff] }
 0x2a8   : > { %1899 = vmatprep.mubr.f32.mxu1 %v1528_v60  ;;  %1984 = vmatprep.mubr.f32.mxu0 %v1530_v61  ;;  %v3416_v56 = vpack.c.bf16 %v1621_v40, %v1620_v39  ;;  %v3418_v60 = vpack.c.bf16 %v1639_v48, %v1638_v47  ;;  %v3450_v61 = vpack.c.bf16 %v1671_v50, %v1670_v49  ;;  %v1675_v39 = vld [vmem:[%s5278_s6 + $0x418] sm:$0xff]  ;;  %v1693_v50 = vld [vmem:[%s5278_s6 + $0x4a8] sm:$0xff] }
 0x2a9   : > { %v4587_v11 = vpop.f32.mrb[12].mxu0  ;;  %v4589_v13 = vpop.f32.mrb[12].mxu1  ;;  %1900 = vmatmul.mubr.f32.gmra.mrb[42].mxu1 %v1527_v2  ;;  %1985 = vmatmul.mubr.f32.gmra.mrb[46].mxu0 %v1529_v3  ;;  %v1720_v2 = vld [vmem:[%s5278_s6 + $0x580] sm:$0xff]  ;;  %v1721_v3 = vld [vmem:[%s5278_s6 + $0x588] sm:$0xff]  ;;  %v3490_v49 = vpack.c.bf16 %v1723_v25, %v1722_v23 }
 0x2aa   : > { %v909_v14 = vpop.f32.mrb[13].mxu0  ;;  %v998_v15 = vpop.f32.mrb[13].mxu1  ;;  %3405 = vmatpush3.bf16.msra.mxu1 %v3404_v58  ;;  %3437 = vmatpush3.bf16.msra.mxu0 %v3436_v59  ;;  %v1622_v58 = vld [vmem:[%s5278_s6 + $0x270] sm:$0xff]  ;;  %v1623_v59 = vld [vmem:[%s5278_s6 + $0x278] sm:$0xff]  ;;  %v1480_v40 = vmul.f32 %v4455_v44, %v4587_v11 }
 0x2ab   : > { %v1481_v20 = vmul.f32 %v4455_v44, %v909_v14  ;;  %v1483_v21 = vmul.f32 %v4455_v44, %v998_v15  ;;  %3407 = vmatprep.subr.bf16.mxu1 %v3406_v62  ;;  %3439 = vmatprep.subr.bf16.mxu0 %v3438_v4  ;;  %v1654_v62 = vld [vmem:[%s5278_s6 + $0x370] sm:$0xff]  ;;  %v3420_v9 = vpack.c.bf16 %v1623_v59, %v1622_v58 }
 0x2ac   : > { %v3452_v10 = vpack.c.bf16 %v1655_v63, %v1654_v62  ;;  %v3454_v14 = vpack.c.bf16 %v1689_v1, %v1688_v0  ;;  %v3486_v15 = vpack.c.bf16 %v1721_v3, %v1720_v2  ;;  %v3492_v63 = vpack.c.bf16 %v1707_v45, %v1706_v43  ;;  %v1676_v0 = vld [vmem:[%s5278_s6 + $0x420] sm:$0xff]  ;;  %v1677_v1 = vld [vmem:[%s5278_s6 + $0x428] sm:$0xff]  ;;  %v1711_v43 = vld [vmem:[%s5278_s6 + $0x538] sm:$0xff] }
 0x2ad   : > { %v4617_v31 = vpop.f32.mrb[14].mxu0  ;;  %v4619_v32 = vpop.f32.mrb[14].mxu1  ;;  %2054 = vmatprep.mubr.f32.mxu1 %v1481_v20  ;;  %2139 = vmatprep.mubr.f32.mxu0 %v1483_v21 }
 0x2ae   : > { %v4621_v33 = vpop.f32.mrb[15].mxu0  ;;  %v4623_v34 = vpop.f32.mrb[15].mxu1  ;;  %3409 = vmatpush3.bf16.msra.mxu1 %v3408_v16  ;;  %3441 = vmatpush3.bf16.msra.mxu0 %v3440_v17  ;;  %v1672_v16 = vld [vmem:[%s5278_s6 + $0x400] sm:$0xff]  ;;  %v1673_v17 = vld [vmem:[%s5278_s6 + $0x408] sm:$0xff]  ;;  %v1497_v2 = vmul.f32 %v4493_v7, %v4617_v31  ;;  %v1499_v3 = vmul.f32 %v4493_v7, %v4619_v32 }
 0x2af   : > { %3411 = vmatprep.subr.bf16.mxu1 %v3410_v12  ;;  %3443 = vmatprep.subr.bf16.mxu0 %v3442_v22  ;;  %v1704_v12 = vld [vmem:[%s5278_s6 + $0x500] sm:$0xff]  ;;  %v1691_v22 = vld [vmem:[%s5278_s6 + $0x498] sm:$0xff]  ;;  %v1498_v47 = vmul.f32 %v4493_v7, %v4621_v33  ;;  %v1500_v11 = vmul.f32 %v4493_v7, %v4623_v34  ;;  %v1725_v34 = vld [vmem:[%s5278_s6 + $0x5a8] sm:$0xff] }
 0x2b0   : > { %v3458_v48 = vpack.c.bf16 %v1691_v22, %v1690_v19  ;;  %v1724_v33 = vld [vmem:[%s5278_s6 + $0x5a0] sm:$0xff]  ;;  %v3464_v19 = vpack.c.bf16 %v1677_v1, %v1676_v0 }
 0x2b1   : > { %v4649_v51 = vpop.f32.mrb[16].mxu0  ;;  %v4651_v52 = vpop.f32.mrb[16].mxu1  ;;  %v3494_v32 = vpack.c.bf16 %v1725_v34, %v1724_v33  ;;  %v1680_v1 = vld [vmem:[%s5278_s6 + $0x440] sm:$0xff] }
 0x2b2   : > { %v4653_v53 = vpop.f32.mrb[17].mxu0  ;;  %v4655_v54 = vpop.f32.mrb[17].mxu1  ;;  %3413 = vmatpush3.bf16.msra.mxu1 %v3412_v35  ;;  %3445 = vmatpush3.bf16.msra.mxu0 %v3444_v38  ;;  %v3456_v35 = vpack.c.bf16 %v1673_v17, %v1672_v16  ;;  %v4726_v38 = vld [vmem:[%s5278_s6 + $0x410] sm:$0xff]  ;;  %v1695_v17 = vld [vmem:[%s5278_s6 + $0x4b8] sm:$0xff] }
 0x2b3   : > { %3415 = vmatprep.subr.bf16.mxu1 %v3414_v41  ;;  %3447 = vmatprep.subr.bf16.mxu0 %v3446_v42  ;;  %v1482_v41 = vmul.f32 %v4455_v44, %v4589_v13  ;;  %v3488_v42 = vpack.c.bf16 %v1705_v18, %v1704_v12  ;;  %v1692_v13 = vld [vmem:[%s5278_s6 + $0x4a0] sm:$0xff]  ;;  %v3460_v58 = vpack.c.bf16 %v1675_v39, %v4726_v38  ;;  %v1694_v16 = vld [vmem:[%s5278_s6 + $0x4b0] sm:$0xff]  ;;  %v1679_v38 = vld [vmem:[%s5278_s6 + $0x438] sm:$0xff] }
 0x2b4   : > { %v1517_v31 = vmul.f32 %v4525_v29, %v4655_v54  ;;  %v1727_v54 = vld [vmem:[%s5278_s6 + $0x5b8] sm:$0xff]  ;;  %v1514_v39 = vmul.f32 %v4525_v29, %v4649_v51 }
 0x2b5   : > { %v4681_v4 = vpop.f32.mrb[18].mxu0  ;;  %v4683_v5 = vpop.f32.mrb[18].mxu1 }
 0x2b6   : > { %v4685_v6 = vpop.f32.mrb[19].mxu0  ;;  %v4687_v8 = vpop.f32.mrb[19].mxu1  ;;  %3417 = vmatpush3.bf16.msra.mxu1 %v3416_v56  ;;  %3449 = vmatpush3.bf16.msra.mxu0 %v3448_v57  ;;  %v1531_v34 = vmul.f32 %v4557_v55, %v4681_v4 }
 0x2b7   : > { %3419 = vmatprep.subr.bf16.mxu1 %v3418_v60  ;;  %3451 = vmatprep.subr.bf16.mxu0 %v3450_v61  ;;  %v1532_v45 = vmul.f32 %v4557_v55, %v4685_v6  ;;  %v1534_v51 = vmul.f32 %v4557_v55, %v4687_v8  ;;  %v1728_v6 = vld [vmem:[%s5278_s6 + $0x5c0] sm:$0xff]  ;;  %v1729_v8 = vld [vmem:[%s5278_s6 + $0x5c8] sm:$0xff] }
 0x2b9   : > { %v1085_v20 = vpop.f32.mrb[20].mxu0  ;;  %v1174_v21 = vpop.f32.mrb[20].mxu1 }
 0x2ba   : > { %v4714_v26 = vmul.f32 %v4455_v44, %v1085_v20  ;;  %v4717_v27 = vmul.f32 %v4455_v44, %v1174_v21  ;;  %v4719_v28 = vpop.f32.mrb[21].mxu0  ;;  %v4721_v30 = vpop.f32.mrb[21].mxu1  ;;  %3421 = vmatpush3.bf16.msra.mxu1 %v3420_v9  ;;  %3453 = vmatpush3.bf16.msra.mxu0 %v3452_v10  ;;  %v3462_v9 = vpack.c.bf16 %v1693_v50, %v1692_v13  ;;  %v1708_v10 = vld [vmem:[%s5278_s6 + $0x520] sm:$0xff] }
 0x2bb   : > { %3455 = vmatprep.subr.bf16.mxu1 %v3454_v14  ;;  %3487 = vmatprep.subr.bf16.mxu0 %v3486_v15  ;;  %v1709_v14 = vld [vmem:[%s5278_s6 + $0x528] sm:$0xff]  ;;  %v1515_v15 = vmul.f32 %v4525_v29, %v4653_v53  ;;  %v1726_v53 = vld [vmem:[%s5278_s6 + $0x5b0] sm:$0xff]  ;;  %v1487_v4 = vmul.f32 %v4455_v44, %v4721_v30  ;;  %v1699_v30 = vld [vmem:[%s5278_s6 + $0x4d8] sm:$0xff] }
 0x2bc   : > { %v3496_v25 = vpack.c.bf16 %v1709_v14, %v1708_v10  ;;  %v1713_v10 = vld [vmem:[%s5278_s6 + $0x548] sm:$0xff]  ;;  %v1698_v14 = vld [vmem:[%s5278_s6 + $0x4d0] sm:$0xff] }
 0x2bd   : > { %v1091_v56 = vpop.f32.mrb[22].mxu0  ;;  %v1180_v57 = vpop.f32.mrb[22].mxu1  ;;  %2055 = vmatmul.mubr.f32.vlgmr.msra.gmra.mrb[44].mxu1 %v1480_v40  ;;  %2140 = vmatmul.mubr.f32.vlgmr.msra.gmra.mrb[48].mxu0 %v1482_v41  ;;  %v1516_v40 = vmul.f32 %v4525_v29, %v4651_v52  ;;  %v3466_v41 = vpack.c.bf16 %v1695_v17, %v1694_v16  ;;  %v3498_v52 = vpack.c.bf16 %v1727_v54, %v1726_v53 }
 0x2be   : > { %v4759_v59 = vmul.f32 %v4493_v7, %v1091_v56  ;;  %v4762_v60 = vmul.f32 %v4493_v7, %v1180_v57  ;;  %v4764_v61 = vpop.f32.mrb[23].mxu0  ;;  %v4766_v62 = vpop.f32.mrb[23].mxu1  ;;  %2059 = vmatprep.mubr.f32.mxu1 %v1498_v47  ;;  %2144 = vmatprep.mubr.f32.mxu0 %v1500_v11  ;;  %v1696_v47 = vld [vmem:[%s5278_s6 + $0x4c0] sm:$0xff]  ;;  %v1697_v11 = vld [vmem:[%s5278_s6 + $0x4c8] sm:$0xff] }
 0x2bf   : > { %3457 = vmatpush3.bf16.msra.mxu1 %v3456_v35  ;;  %3489 = vmatpush3.bf16.msra.mxu0 %v3488_v42  ;;  %v1678_v35 = vld [vmem:[%s5278_s6 + $0x430] sm:$0xff]  ;;  %v3470_v0 = vpack.c.bf16 %v1697_v11, %v1696_v47  ;;  %v1733_v47 = vld [vmem:[%s5278_s6 + $0x5e8] sm:$0xff] }
 0x2c0   : > { %3459 = vmatprep.subr.bf16.mxu1 %v3458_v48  ;;  %3491 = vmatprep.subr.bf16.mxu0 %v3490_v49  ;;  %v1710_v42 = vld [vmem:[%s5278_s6 + $0x530] sm:$0xff]  ;;  %v3468_v13 = vpack.c.bf16 %v1679_v38, %v1678_v35  ;;  %v1683_v38 = vld [vmem:[%s5278_s6 + $0x458] sm:$0xff] }
 0x2c1   : > { %v1097_v12 = vpop.f32.mrb[24].mxu0  ;;  %v1186_v18 = vpop.f32.mrb[24].mxu1  ;;  %2060 = vmatmul.mubr.f32.gmra.mrb[46].mxu1 %v1497_v2  ;;  %2145 = vmatmul.mubr.f32.gmra.mrb[50].mxu0 %v1499_v3  ;;  %v3500_v33 = vpack.c.bf16 %v1711_v43, %v1710_v42  ;;  %v1681_v2 = vld [vmem:[%s5278_s6 + $0x448] sm:$0xff]  ;;  %v1485_v3 = vmul.f32 %v4455_v44, %v4719_v28  ;;  %v1682_v35 = vld [vmem:[%s5278_s6 + $0x450] sm:$0xff]  ;;  %v1700_v42 = vld [vmem:[%s5278_s6 + $0x4e0] sm:$0xff] }
 0x2c2   : > { %v4801_v20 = vmul.f32 %v4525_v29, %v1097_v12  ;;  %v4804_v21 = vmul.f32 %v4525_v29, %v1186_v18  ;;  %v4806_v22 = vpop.f32.mrb[25].mxu0  ;;  %v4808_v23 = vpop.f32.mrb[25].mxu1  ;;  %2064 = vmatprep.mubr.f32.mxu1 %v1515_v15  ;;  %2149 = vmatprep.mubr.f32.mxu0 %v1517_v31  ;;  %v1730_v31 = vld [vmem:[%s5278_s6 + $0x5d0] sm:$0xff] }
 0x2c3   : > { %3461 = vmatpush3.bf16.msra.mxu1 %v3460_v58  ;;  %3493 = vmatpush3.bf16.msra.mxu0 %v3492_v63  ;;  %v1533_v63 = vmul.f32 %v4557_v55, %v4683_v5  ;;  %v3502_v5 = vpack.c.bf16 %v1729_v8, %v1728_v6  ;;  %v3476_v6 = vpack.c.bf16 %v1683_v38, %v1682_v35  ;;  %v1686_v38 = vld [vmem:[%s5278_s6 + $0x470] sm:$0xff] }
 0x2c4   : > { %3463 = vmatprep.subr.bf16.mxu1 %v3462_v9  ;;  %3495 = vmatprep.subr.bf16.mxu0 %v3494_v32  ;;  %v1712_v9 = vld [vmem:[%s5278_s6 + $0x540] sm:$0xff]  ;;  %v1731_v32 = vld [vmem:[%s5278_s6 + $0x5d8] sm:$0xff] }
 0x2c5   : > { %v1103_v48 = vpop.f32.mrb[26].mxu0  ;;  %v1192_v49 = vpop.f32.mrb[26].mxu1  ;;  %2065 = vmatmul.mubr.f32.gmra.mrb[48].mxu1 %v1514_v39  ;;  %2150 = vmatmul.mubr.f32.gmra.mrb[52].mxu0 %v1516_v40  ;;  %v3474_v39 = vpack.c.bf16 %v1699_v30, %v1698_v14  ;;  %v3506_v40 = vpack.c.bf16 %v1731_v32, %v1730_v31  ;;  %v1703_v14 = vld [vmem:[%s5278_s6 + $0x4f8] sm:$0xff] }
 0x2c6   : > { %v4843_v50 = vmul.f32 %v4557_v55, %v1103_v48  ;;  %v4846_v56 = vmul.f32 %v4557_v55, %v1192_v49  ;;  %v4848_v57 = vpop.f32.mrb[27].mxu0  ;;  %v4850_v58 = vpop.f32.mrb[27].mxu1  ;;  %2069 = vmatprep.mubr.f32.mxu1 %v1532_v45  ;;  %2154 = vmatprep.mubr.f32.mxu0 %v1534_v51  ;;  %v1701_v51 = vld [vmem:[%s5278_s6 + $0x4e8] sm:$0xff] }
 0x2c7   : > { %3465 = vmatpush3.bf16.msra.mxu1 %v3464_v19  ;;  %3497 = vmatpush3.bf16.msra.mxu0 %v3496_v25  ;;  %v3472_v19 = vpack.c.bf16 %v1681_v2, %v1680_v1  ;;  %v3504_v25 = vpack.c.bf16 %v1713_v10, %v1712_v9  ;;  %v3478_v1 = vpack.c.bf16 %v1701_v51, %v1700_v42  ;;  %v1719_v42 = vld [vmem:[%s5278_s6 + $0x578] sm:$0xff] }
 0x2c8   : > { %3467 = vmatprep.subr.bf16.mxu1 %v3466_v41  ;;  %3499 = vmatprep.subr.bf16.mxu0 %v3498_v52  ;;  %v1715_v41 = vld [vmem:[%s5278_s6 + $0x558] sm:$0xff]  ;;  %v1732_v52 = vld [vmem:[%s5278_s6 + $0x5e0] sm:$0xff] }
 0x2c9   : > { %v1263_v15 = vpop.f32.mrb[28].mxu0  ;;  %v1352_v28 = vpop.f32.mrb[28].mxu1  ;;  %2070 = vmatmul.mubr.f32.gmra.mrb[50].mxu1 %v1531_v34  ;;  %2155 = vmatmul.mubr.f32.gmra.mrb[54].mxu0 %v1533_v63  ;;  %v1684_v63 = vld [vmem:[%s5278_s6 + $0x460] sm:$0xff]  ;;  %v3510_v2 = vpack.c.bf16 %v1733_v47, %v1732_v52  ;;  %v1753_v52 = vld [vmem:[%s5278_s6 + $0x688] sm:$0xff] }
 0x2ca   : > { %v4885_v16 = vmul.f32 %v4455_v44, %v1263_v15  ;;  %v4888_v17 = vmul.f32 %v4455_v44, %v1352_v28  ;;  %v1265_v12 = vpop.f32.mrb[29].mxu0  ;;  %v1354_v18 = vpop.f32.mrb[29].mxu1  ;;  %2224 = vmatprep.mubr.f32.mxu1 %v1485_v3  ;;  %2309 = vmatprep.mubr.f32.mxu0 %v1487_v4  ;;  %v1716_v3 = vld [vmem:[%s5278_s6 + $0x560] sm:$0xff]  ;;  %v1717_v4 = vld [vmem:[%s5278_s6 + $0x568] sm:$0xff]  ;;  %v1734_v15 = vld [vmem:[%s5278_s6 + $0x5f0] sm:$0xff] }
 0x2cb   : > { %v4891_v53 = vmul.f32 %v4455_v44, %v1265_v12  ;;  %v4894_v54 = vmul.f32 %v4455_v44, %v1354_v18  ;;  %3469 = vmatpush3.bf16.msra.mxu1 %v3468_v13  ;;  %3501 = vmatpush3.bf16.msra.mxu0 %v3500_v33  ;;  %v1714_v44 = vld [vmem:[%s5278_s6 + $0x550] sm:$0xff]  ;;  %v1735_v28 = vld [vmem:[%s5278_s6 + $0x5f8] sm:$0xff]  ;;  %v3512_v35 = vpack.c.bf16 %v1717_v4, %v1716_v3  ;;  %v1784_v47 = vld [vmem:[%s5278_s6 + $0x780] sm:$0xff] }
 0x2cc   : > { %3471 = vmatprep.subr.bf16.mxu1 %v3470_v0  ;;  %3503 = vmatprep.subr.bf16.mxu0 %v3502_v5  ;;  %v3508_v34 = vpack.c.bf16 %v1715_v41, %v1714_v44  ;;  %v1685_v0 = vld [vmem:[%s5278_s6 + $0x468] sm:$0xff]  ;;  %v1702_v5 = vld [vmem:[%s5278_s6 + $0x4f0] sm:$0xff]  ;;  %v3514_v44 = vpack.c.bf16 %v1735_v28, %v1734_v15  ;;  %v1768_v15 = vld [vmem:[%s5278_s6 + $0x700] sm:$0xff] }
 0x2cd   : > { %v1269_v43 = vpop.f32.mrb[30].mxu0  ;;  %v1358_v45 = vpop.f32.mrb[30].mxu1  ;;  %v3480_v18 = vpack.c.bf16 %v1685_v0, %v1684_v63  ;;  %v1718_v41 = vld [vmem:[%s5278_s6 + $0x570] sm:$0xff]  ;;  %v1769_v28 = vld [vmem:[%s5278_s6 + $0x708] sm:$0xff] }
 0x2ce   : > { %v4921_v11 = vmul.f32 %v4493_v7, %v1269_v43  ;;  %v4924_v48 = vmul.f32 %v4493_v7, %v1358_v45  ;;  %v1271_v49 = vpop.f32.mrb[31].mxu0  ;;  %v1360_v13 = vpop.f32.mrb[31].mxu1  ;;  %v1752_v43 = vld [vmem:[%s5278_s6 + $0x680] sm:$0xff]  ;;  %v3516_v3 = vpack.c.bf16 %v1719_v42, %v1718_v41  ;;  %v1739_v41 = vld [vmem:[%s5278_s6 + $0x618] sm:$0xff]  ;;  %v1770_v42 = vld [vmem:[%s5278_s6 + $0x710] sm:$0xff] }
 0x2cf   : > { %v4927_v8 = vmul.f32 %v4493_v7, %v1271_v49  ;;  %v4930_v33 = vmul.f32 %v4493_v7, %v1360_v13  ;;  %3473 = vmatpush3.bf16.msra.mxu1 %v3472_v19  ;;  %3505 = vmatpush3.bf16.msra.mxu0 %v3504_v25  ;;  %v1785_v49 = vld [vmem:[%s5278_s6 + $0x788] sm:$0xff]  ;;  %v3518_v4 = vpack.c.bf16 %v1753_v52, %v1752_v43 }
 0x2d0   : > { %3475 = vmatprep.subr.bf16.mxu1 %v3474_v39  ;;  %3507 = vmatprep.subr.bf16.mxu0 %v3506_v40  ;;  %v1687_v39 = vld [vmem:[%s5278_s6 + $0x478] sm:$0xff]  ;;  %v3482_v40 = vpack.c.bf16 %v1703_v14, %v1702_v5  ;;  %v3550_v5 = vpack.c.bf16 %v1785_v49, %v1784_v47  ;;  %v1502_v43 = vmul.f32 %v4493_v7, %v4764_v61  ;;  %v1788_v61 = vld [vmem:[%s5278_s6 + $0x7a0] sm:$0xff] }
 0x2d1   : > { %v1275_v9 = vpop.f32.mrb[32].mxu0  ;;  %v1364_v10 = vpop.f32.mrb[32].mxu1  ;;  %v3484_v0 = vpack.c.bf16 %v1687_v39, %v1686_v38  ;;  %v1787_v38 = vld [vmem:[%s5278_s6 + $0x798] sm:$0xff] }
 0x2d2   : > { %v4957_v30 = vmul.f32 %v4525_v29, %v1275_v9  ;;  %v4960_v31 = vmul.f32 %v4525_v29, %v1364_v10  ;;  %v1277_v32 = vpop.f32.mrb[33].mxu0  ;;  %v1366_v12 = vpop.f32.mrb[33].mxu1  ;;  %v1736_v9 = vld [vmem:[%s5278_s6 + $0x600] sm:$0xff]  ;;  %v1737_v10 = vld [vmem:[%s5278_s6 + $0x608] sm:$0xff]  ;;  %v1771_v49 = vld [vmem:[%s5278_s6 + $0x718] sm:$0xff] }
 0x2d3   : > { %v4963_v19 = vmul.f32 %v4525_v29, %v1277_v32  ;;  %v4966_v25 = vmul.f32 %v4525_v29, %v1366_v12  ;;  %3477 = vmatpush3.bf16.msra.mxu1 %v3476_v6  ;;  %3509 = vmatpush3.bf16.msra.mxu0 %v3508_v34  ;;  %v1754_v32 = vld [vmem:[%s5278_s6 + $0x690] sm:$0xff]  ;;  %v3520_v39 = vpack.c.bf16 %v1737_v10, %v1736_v9 }
 0x2d4   : > { %3479 = vmatprep.subr.bf16.mxu1 %v3478_v1  ;;  %3511 = vmatprep.subr.bf16.mxu0 %v3510_v2  ;;  %v1519_v9 = vmul.f32 %v4525_v29, %v4806_v22  ;;  %v1521_v10 = vmul.f32 %v4525_v29, %v4808_v23  ;;  %v1790_v29 = vld [vmem:[%s5278_s6 + $0x7b0] sm:$0xff]  ;;  %v1791_v22 = vld [vmem:[%s5278_s6 + $0x7b8] sm:$0xff] }
 0x2d5   : > { %v1281_v45 = vpop.f32.mrb[34].mxu0  ;;  %v1370_v51 = vpop.f32.mrb[34].mxu1 }
 0x2d6   : > { %v4993_v13 = vmul.f32 %v4557_v55, %v1281_v45  ;;  %v4996_v6 = vmul.f32 %v4557_v55, %v1370_v51  ;;  %v1283_v34 = vpop.f32.mrb[35].mxu0  ;;  %v1372_v63 = vpop.f32.mrb[35].mxu1  ;;  %v1504_v45 = vmul.f32 %v4493_v7, %v4766_v62  ;;  %v1789_v62 = vld [vmem:[%s5278_s6 + $0x7a8] sm:$0xff] }
 0x2d7   : > { %v4999_v1 = vmul.f32 %v4557_v55, %v1283_v34  ;;  %v5002_v2 = vmul.f32 %v4557_v55, %v1372_v63  ;;  %3481 = vmatpush3.bf16.msra.mxu1 %v3480_v18  ;;  %3513 = vmatpush3.bf16.msra.mxu0 %v3512_v35  ;;  %v1755_v18 = vld [vmem:[%s5278_s6 + $0x698] sm:$0xff]  ;;  %v1786_v35 = vld [vmem:[%s5278_s6 + $0x790] sm:$0xff]  ;;  %v1756_v34 = vld [vmem:[%s5278_s6 + $0x6a0] sm:$0xff] }
 0x2d8   : > { %3483 = vmatprep.subr.bf16.mxu1 %v3482_v40  ;;  %3515 = vmatprep.subr.bf16.mxu0 %v3514_v44  ;;  %v3552_v40 = vpack.c.bf16 %v1769_v28, %v1768_v15  ;;  %v1738_v44 = vld [vmem:[%s5278_s6 + $0x610] sm:$0xff]  ;;  %v3522_v52 = vpack.c.bf16 %v1755_v18, %v1754_v32  ;;  %v3554_v47 = vpack.c.bf16 %v1787_v38, %v1786_v35  ;;  %v1757_v63 = vld [vmem:[%s5278_s6 + $0x6a8] sm:$0xff]  ;;  %v1759_v18 = vld [vmem:[%s5278_s6 + $0x6b8] sm:$0xff] }
 0x2d9   : > { %v5010_v14 = vpop.f32.mrb[36].mxu0  ;;  %v3558_v15 = vpack.c.bf16 %v1789_v62, %v1788_v61  ;;  %v1773_v28 = vld [vmem:[%s5278_s6 + $0x728] sm:$0xff]  ;;  %v1758_v32 = vld [vmem:[%s5278_s6 + $0x6b0] sm:$0xff]  ;;  %v1763_v62 = vld [vmem:[%s5278_s6 + $0x6d8] sm:$0xff] }
 0x2da   : > { %v5021_v12 = vpop.f32.mrb[37].mxu0  ;;  %v3530_v38 = vpack.c.bf16 %v1759_v18, %v1758_v32  ;;  %v1762_v61 = vld [vmem:[%s5278_s6 + $0x6d0] sm:$0xff] }
 0x2db   : > { %3485 = vmatpush3.bf16.msra.mxu1 %v3484_v0  ;;  %3517 = vmatpush3.bf16.msra.mxu0 %v3516_v3  ;;  %v3524_v0 = vpack.c.bf16 %v1739_v41, %v1738_v44  ;;  %v3556_v3 = vpack.c.bf16 %v1771_v49, %v1770_v42  ;;  %v3562_v44 = vpack.c.bf16 %v1791_v22, %v1790_v29  ;;  %v1774_v41 = vld [vmem:[%s5278_s6 + $0x730] sm:$0xff]  ;;  %v1775_v42 = vld [vmem:[%s5278_s6 + $0x738] sm:$0xff]  ;;  %v1748_v29 = vld [vmem:[%s5278_s6 + $0x660] sm:$0xff] }
 0x2dc   : > { %3519 = vmatprep.subr.bf16.mxu1 %v3518_v4  ;;  %3551 = vmatprep.subr.bf16.mxu0 %v3550_v5  ;;  %v3526_v4 = vpack.c.bf16 %v1757_v63, %v1756_v34  ;;  %v1772_v5 = vld [vmem:[%s5278_s6 + $0x720] sm:$0xff]  ;;  %v1777_v63 = vld [vmem:[%s5278_s6 + $0x748] sm:$0xff] }
 0x2dd   : > { %v5045_v51 = vpop.f32.mrb[38].mxu0  ;;  %v3560_v35 = vpack.c.bf16 %v1773_v28, %v1772_v5  ;;  %v1776_v34 = vld [vmem:[%s5278_s6 + $0x740] sm:$0xff]  ;;  %v1797_v28 = vld [vmem:[%s5278_s6 + $0x7e8] sm:$0xff] }
 0x2de   : > { %2225 = vmatmul.mubr.f32.vlgmr.msra.gmra.mrb[52].mxu1 %v4714_v26  ;;  %2310 = vmatmul.mubr.f32.vlgmr.msra.gmra.mrb[56].mxu0 %v4717_v27  ;;  %v5058_v7 = vpop.f32.mrb[39].mxu0  ;;  %v1740_v26 = vld [vmem:[%s5278_s6 + $0x620] sm:$0xff]  ;;  %v1741_v27 = vld [vmem:[%s5278_s6 + $0x628] sm:$0xff] }
 0x2df   : > { %2229 = vmatprep.mubr.f32.mxu1 %v1502_v43  ;;  %2314 = vmatprep.mubr.f32.mxu0 %v1504_v45  ;;  %v3528_v23 = vpack.c.bf16 %v1741_v27, %v1740_v26  ;;  %v1760_v43 = vld [vmem:[%s5278_s6 + $0x6c0] sm:$0xff]  ;;  %v1747_v26 = vld [vmem:[%s5278_s6 + $0x658] sm:$0xff]  ;;  %v3538_v27 = vpack.c.bf16 %v1763_v62, %v1762_v61  ;;  %v1749_v22 = vld [vmem:[%s5278_s6 + $0x668] sm:$0xff] }
 0x2e0   : > { %3521 = vmatpush3.bf16.msra.mxu1 %v3520_v39  ;;  %3553 = vmatpush3.bf16.msra.mxu0 %v3552_v40  ;;  %v1536_v39 = vmul.f32 %v4557_v55, %v4848_v57  ;;  %v1538_v40 = vmul.f32 %v4557_v55, %v4850_v58  ;;  %v1761_v55 = vld [vmem:[%s5278_s6 + $0x6c8] sm:$0xff]  ;;  %v1792_v57 = vld [vmem:[%s5278_s6 + $0x7c0] sm:$0xff]  ;;  %v1803_v61 = vld [vmem:[%s5278_s6 + $0x818] sm:$0xff] }
 0x2e1   : > { %3523 = vmatprep.subr.bf16.mxu1 %v3522_v52  ;;  %3555 = vmatprep.subr.bf16.mxu0 %v3554_v47  ;;  %v1793_v58 = vld [vmem:[%s5278_s6 + $0x7c8] sm:$0xff]  ;;  %v3534_v47 = vpack.c.bf16 %v1761_v55, %v1760_v43  ;;  %v1750_v43 = vld [vmem:[%s5278_s6 + $0x670] sm:$0xff] }
 0x2e2   : > { %2230 = vmatmul.mubr.f32.gmra.mrb[54].mxu1 %v4759_v59  ;;  %2315 = vmatmul.mubr.f32.gmra.mrb[58].mxu0 %v4762_v60  ;;  %v1742_v59 = vld [vmem:[%s5278_s6 + $0x630] sm:$0xff]  ;;  %v1743_v60 = vld [vmem:[%s5278_s6 + $0x638] sm:$0xff]  ;;  %v1745_v52 = vld [vmem:[%s5278_s6 + $0x648] sm:$0xff]  ;;  %v3566_v49 = vpack.c.bf16 %v1793_v58, %v1792_v57 }
 0x2e3   : > { %2234 = vmatprep.mubr.f32.mxu1 %v1519_v9  ;;  %2319 = vmatprep.mubr.f32.mxu0 %v1521_v10  ;;  %v3532_v45 = vpack.c.bf16 %v1743_v60, %v1742_v59  ;;  %v1764_v9 = vld [vmem:[%s5278_s6 + $0x6e0] sm:$0xff]  ;;  %v1765_v10 = vld [vmem:[%s5278_s6 + $0x6e8] sm:$0xff]  ;;  %v1766_v60 = vld [vmem:[%s5278_s6 + $0x6f0] sm:$0xff] }
 0x2e4   : > { %3525 = vmatpush3.bf16.msra.mxu1 %v3524_v0  ;;  %3557 = vmatpush3.bf16.msra.mxu0 %v3556_v3  ;;  %v1794_v0 = vld [vmem:[%s5278_s6 + $0x7d0] sm:$0xff]  ;;  %v1795_v3 = vld [vmem:[%s5278_s6 + $0x7d8] sm:$0xff]  ;;  %v1781_v59 = vld [vmem:[%s5278_s6 + $0x768] sm:$0xff] }
 0x2e5   : > { %3527 = vmatprep.subr.bf16.mxu1 %v3526_v4  ;;  %3559 = vmatprep.subr.bf16.mxu0 %v3558_v15  ;;  %v1746_v4 = vld [vmem:[%s5278_s6 + $0x650] sm:$0xff]  ;;  %v3570_v5 = vpack.c.bf16 %v1795_v3, %v1794_v0  ;;  %v1796_v15 = vld [vmem:[%s5278_s6 + $0x7e0] sm:$0xff]  ;;  %v1751_v58 = vld [vmem:[%s5278_s6 + $0x678] sm:$0xff] }
 0x2e6   : > { %2235 = vmatmul.mubr.f32.gmra.mrb[56].mxu1 %v4801_v20  ;;  %2320 = vmatmul.mubr.f32.gmra.mrb[60].mxu0 %v4804_v21  ;;  %v3564_v20 = vpack.c.bf16 %v1775_v42, %v1774_v41  ;;  %v1744_v21 = vld [vmem:[%s5278_s6 + $0x640] sm:$0xff]  ;;  %v3540_v32 = vpack.c.bf16 %v1747_v26, %v1746_v4  ;;  %v3544_v41 = vpack.c.bf16 %v1749_v22, %v1748_v29  ;;  %v1805_v3 = vld [vmem:[%s5278_s6 + $0x828] sm:$0xff] }
 0x2e7   : > { %2239 = vmatprep.mubr.f32.mxu1 %v1536_v39  ;;  %2324 = vmatprep.mubr.f32.mxu0 %v1538_v40  ;;  %v1767_v39 = vld [vmem:[%s5278_s6 + $0x6f8] sm:$0xff]  ;;  %v1798_v40 = vld [vmem:[%s5278_s6 + $0x7f0] sm:$0xff]  ;;  %v1804_v0 = vld [vmem:[%s5278_s6 + $0x820] sm:$0xff] }
 0x2e8   : > { %3529 = vmatpush3.bf16.msra.mxu1 %v3528_v23  ;;  %3561 = vmatpush3.bf16.msra.mxu0 %v3560_v35  ;;  %v3542_v23 = vpack.c.bf16 %v1765_v10, %v1764_v9  ;;  %v3574_v35 = vpack.c.bf16 %v1797_v28, %v1796_v15  ;;  %v3546_v55 = vpack.c.bf16 %v1767_v39, %v1766_v60 }
 0x2e9   : > { %3531 = vmatprep.subr.bf16.mxu1 %v3530_v38  ;;  %3563 = vmatprep.subr.bf16.mxu0 %v3562_v44  ;;  %v1780_v38 = vld [vmem:[%s5278_s6 + $0x760] sm:$0xff]  ;;  %v1799_v44 = vld [vmem:[%s5278_s6 + $0x7f8] sm:$0xff] }
 0x2ea   : > { %2240 = vmatmul.mubr.f32.gmra.mrb[58].mxu1 %v4843_v50  ;;  %2325 = vmatmul.mubr.f32.gmra.mrb[62].mxu0 %v4846_v56  ;;  %v3536_v50 = vpack.c.bf16 %v1745_v52, %v1744_v21  ;;  %v3568_v56 = vpack.c.bf16 %v1777_v63, %v1776_v34  ;;  %v3576_v42 = vpack.c.bf16 %v1781_v59, %v1780_v38  ;;  %v1800_v21 = vld [vmem:[%s5278_s6 + $0x800] sm:$0xff]  ;;  %v1801_v52 = vld [vmem:[%s5278_s6 + $0x808] sm:$0xff]  ;;  %v1802_v63 = vld [vmem:[%s5278_s6 + $0x810] sm:$0xff] }
 0x2eb   : > { %2394 = vmatprep.mubr.f32.mxu1 %v4891_v53  ;;  %2479 = vmatprep.mubr.f32.mxu0 %v4894_v54  ;;  %v1778_v53 = vld [vmem:[%s5278_s6 + $0x750] sm:$0xff]  ;;  %v1779_v54 = vld [vmem:[%s5278_s6 + $0x758] sm:$0xff]  ;;  %v3578_v57 = vpack.c.bf16 %v1799_v44, %v1798_v40  ;;  %v3582_v34 = vpack.c.bf16 %v1801_v52, %v1800_v21  ;;  %v3586_v62 = vpack.c.bf16 %v1803_v61, %v1802_v63 }
 0x2ec   : > { %3533 = vmatpush3.bf16.msra.mxu1 %v3532_v45  ;;  %3565 = vmatpush3.bf16.msra.mxu0 %v3564_v20  ;;  %v3572_v18 = vpack.c.bf16 %v1779_v54, %v1778_v53  ;;  %v1782_v45 = vld [vmem:[%s5278_s6 + $0x770] sm:$0xff]  ;;  %v1783_v20 = vld [vmem:[%s5278_s6 + $0x778] sm:$0xff] }
 0x2ed   : > { %3535 = vmatprep.subr.bf16.mxu1 %v3534_v47  ;;  %3567 = vmatprep.subr.bf16.mxu0 %v3566_v49  ;;  %v3548_v47 = vpack.c.bf16 %v1751_v58, %v1750_v43  ;;  %v3580_v49 = vpack.c.bf16 %v1783_v20, %v1782_v45 }
 0x2f0   : > { %3537 = vmatpush3.bf16.msra.mxu1 %v3536_v50  ;;  %3569 = vmatpush3.bf16.msra.mxu0 %v3568_v56  ;;  %v3590_v50 = vpack.c.bf16 %v1805_v3, %v1804_v0 }
 0x2f1   : > { %3539 = vmatprep.subr.bf16.mxu1 %v3538_v27  ;;  %3571 = vmatprep.subr.bf16.mxu0 %v3570_v5 }
 0x2f4   : > { %3541 = vmatpush3.bf16.msra.mxu1 %v3540_v32  ;;  %3573 = vmatpush3.bf16.msra.mxu0 %v3572_v18 }
 0x2f5   : > { %3543 = vmatprep.subr.bf16.mxu1 %v3542_v23  ;;  %3575 = vmatprep.subr.bf16.mxu0 %v3574_v35 }
 0x2f8   : > { %3545 = vmatpush3.bf16.msra.mxu1 %v3544_v41  ;;  %3577 = vmatpush3.bf16.msra.mxu0 %v3576_v42 }
 0x2f9   : > { %3547 = vmatprep.subr.bf16.mxu1 %v3546_v55  ;;  %3579 = vmatprep.subr.bf16.mxu0 %v3578_v57 }
 0x2fc   : > { %3549 = vmatpush3.bf16.msra.mxu1 %v3548_v47  ;;  %3581 = vmatpush3.bf16.msra.mxu0 %v3580_v49 }
 0x2fd   : > { %3583 = vmatprep.subr.bf16.mxu1 %v3582_v34 }
 0x2ff   : > { %2395 = vmatmul.mubr.f32.vlgmr.msra.gmra.mrb[60].mxu1 %v4885_v16  ;;  %2480 = vmatmul.mubr.f32.vlgmr.msra.gmra.mrb[64].mxu0 %v4888_v17  ;;  %v1806_v16 = vld [vmem:[%s5278_s6 + $0x830] sm:$0xff]  ;;  %v1807_v17 = vld [vmem:[%s5278_s6 + $0x838] sm:$0xff] }
 0x300   : > { %2399 = vmatprep.mubr.f32.mxu1 %v4927_v8  ;;  %2484 = vmatprep.mubr.f32.mxu0 %v4930_v33  ;;  %v3594_v8 = vpack.c.bf16 %v1807_v17, %v1806_v16  ;;  %v1526_v33 = vmul.f32 %v5058_v7, %v3859_v37 }
 0x301   : > { %3585 = vmatpush3.bf16.msra.mxu1 %v3582_v34 }
 0x302   : > { %3587 = vmatprep.subr.bf16.mxu1 %v3586_v62 }
 0x303   : > { %2400 = vmatmul.mubr.f32.gmra.mrb[62].mxu1 %v4921_v11  ;;  %2485 = vmatmul.mubr.f32.gmra.mrb[66].mxu0 %v4924_v48  ;;  %v1492_v11 = vmul.f32 %v5021_v12, %v3831_v24  ;;  %v1509_v48 = vmul.f32 %v5010_v14, %v3857_v36  ;;  %v1543_v24 = vmul.f32 %v5045_v51, %v3881_v46 }
 0x304   : > { %2404 = vmatprep.mubr.f32.mxu1 %v4963_v19  ;;  %2489 = vmatprep.mubr.f32.mxu0 %v4966_v25 }
 0x305   : > { %3589 = vmatpush3.bf16.msra.mxu1 %v3586_v62 }
 0x306   : > { %3591 = vmatprep.subr.bf16.mxu1 %v3590_v50 }
 0x307   : > { %2405 = vmatmul.mubr.f32.gmra.mrb[64].mxu1 %v4957_v30  ;;  %2490 = vmatmul.mubr.f32.gmra.mrb[68].mxu0 %v4960_v31  ;;  %v3629_v30 = vmov 32  }
 0x308   : > { %2409 = vmatprep.mubr.f32.mxu1 %v4999_v1  ;;  %2494 = vmatprep.mubr.f32.mxu0 %v5002_v2 }
 0x309   : > { %3593 = vmatpush3.bf16.msra.mxu1 %v3590_v50  ;;  %3609 = vset.pattern.permute.xlu1 %v3629_v30 }
 0x30a   : > { %3595 = vmatprep.subr.bf16.mxu1 %v3594_v8  ;;  %3610 = vset.pattern.permute.xlu0 %v3629_v30 }
 0x30b   : > { %2410 = vmatmul.mubr.f32.gmra.mrb[66].mxu1 %v4993_v13  ;;  %2495 = vmatmul.mubr.f32.gmra.mrb[70].mxu0 %v4996_v6 }
 0x30c   : > { %3176 = vmatprep.mubr.msk.f32.mxu1 %vm650_vm7, %v1492_v11 }
 0x30d   : > { %3597 = vmatpush3.bf16.msra.mxu1 %v3594_v8 }
 0x310   : > { %3177 = vmatmul.mubr.msk.f32.vlgmr.msra.gmra.mrb[68].mxu1 %vm650_vm7, %v1509_v48 }
 0x311   : > { %3179 = vmatprep.mubr.msk.f32.mxu1 %vm650_vm7, %v1526_v33 }
 0x314   : > { %3180 = vmatmul.mubr.msk.f32.gmra.mrb[70].mxu1 %vm650_vm7, %v1543_v24 }
 0x36f   : > { %v2790_v31 = vpop.f32.mrb[36].mxu1 }
 0x370   : > { %v2834_v19 = vpop.f32.mrb[40].mxu0  ;;  %v2791_v25 = vpop.f32.mrb[37].mxu1 }
 0x371   : > { %v2792_v13 = vadd.f32 %v2791_v25, %v2790_v31  ;;  %v2835_v36 = vpop.f32.mrb[41].mxu0 }
 0x372   : > { %v2836_v6 = vadd.f32 %v2835_v36, %v2834_v19 }
 0x374   : > { %v1972_v1 = vadd.f32 %v2836_v6, %v2792_v13  ;;  %v2793_v37 = vpop.f32.mrb[38].mxu1  ;;  %v2837_v2 = vpop.f32.mrb[42].mxu0 }
 0x375   : > { %v2794_v14 = vpop.f32.mrb[39].mxu1  ;;  %v2838_v12 = vpop.f32.mrb[43].mxu0 }
 0x376   : > { %v2795_v7 = vadd.f32 %v2794_v14, %v2793_v37  ;;  %v2839_v56 = vadd.f32 %v2838_v12, %v2837_v2 }
 0x378   : > { %v1977_v4 = vadd.f32 %v2839_v56, %v2795_v7  ;;  %v2796_v46 = vpop.f32.mrb[40].mxu1  ;;  %v2840_v51 = vpop.f32.mrb[44].mxu0 }
 0x379   : > { %v2797_v26 = vpop.f32.mrb[41].mxu1  ;;  %v2841_v27 = vpop.f32.mrb[45].mxu0 }
 0x37a   : > { %v2798_v5 = vadd.f32 %v2797_v26, %v2796_v46  ;;  %v2842_v53 = vadd.f32 %v2841_v27, %v2840_v51 }
 0x37c   : > { %v1982_v54 = vadd.f32 %v2842_v53, %v2798_v5  ;;  %v2799_v9 = vpop.f32.mrb[42].mxu1  ;;  %v2843_v10 = vpop.f32.mrb[46].mxu0 }
 0x37d   : > { %v2800_v15 = vpop.f32.mrb[43].mxu1  ;;  %v2844_v28 = vpop.f32.mrb[47].mxu0 }
 0x37e   : > { %v2801_v32 = vadd.f32 %v2800_v15, %v2799_v9  ;;  %v2845_v18 = vadd.f32 %v2844_v28, %v2843_v10 }
 0x380   : > { %v1987_v29 = vadd.f32 %v2845_v18, %v2801_v32 }
 0x390   : > { %v2878_v22 = vpop.f32.mrb[44].mxu1  ;;  %v2922_v23 = vpop.f32.mrb[48].mxu0 }
 0x391   : > { %v2879_v35 = vpop.f32.mrb[45].mxu1  ;;  %v2923_v38 = vpop.f32.mrb[49].mxu0 }
 0x392   : > { %v2880_v59 = vadd.f32 %v2879_v35, %v2878_v22  ;;  %v2924_v60 = vadd.f32 %v2923_v38, %v2922_v23 }
 0x394   : > { %v2057_v39 = vadd.f32 %v2880_v59, %v1972_v1  ;;  %v2881_v40 = vpop.f32.mrb[46].mxu1  ;;  %v2925_v44 = vpop.f32.mrb[50].mxu0 }
 0x395   : > { %v2882_v41 = vpop.f32.mrb[47].mxu1  ;;  %v2926_v42 = vpop.f32.mrb[51].mxu0 }
 0x396   : > { %v2142_v43 = vadd.f32 %v2924_v60, %v2057_v39  ;;  %v2883_v55 = vadd.f32 %v2882_v41, %v2881_v40  ;;  %v2927_v57 = vadd.f32 %v2926_v42, %v2925_v44 }
 0x398   : > { %v2062_v58 = vadd.f32 %v2883_v55, %v1977_v4  ;;  %v2884_v45 = vpop.f32.mrb[48].mxu1  ;;  %v2928_v20 = vpop.f32.mrb[52].mxu0 }
 0x399   : > { %v2885_v21 = vpop.f32.mrb[49].mxu1  ;;  %v2929_v52 = vpop.f32.mrb[53].mxu0 }
 0x39a   : > { %v2147_v47 = vadd.f32 %v2927_v57, %v2062_v58  ;;  %v2886_v49 = vadd.f32 %v2885_v21, %v2884_v45  ;;  %v2930_v34 = vadd.f32 %v2929_v52, %v2928_v20 }
 0x39c   : > { %v2067_v63 = vadd.f32 %v2886_v49, %v1982_v54  ;;  %v2887_v61 = vpop.f32.mrb[50].mxu1  ;;  %v2931_v62 = vpop.f32.mrb[54].mxu0 }
 0x39d   : > { %v2888_v0 = vpop.f32.mrb[51].mxu1  ;;  %v2932_v3 = vpop.f32.mrb[55].mxu0 }
 0x39e   : > { %v2152_v50 = vadd.f32 %v2930_v34, %v2067_v63  ;;  %v2889_v16 = vadd.f32 %v2888_v0, %v2887_v61  ;;  %v2933_v17 = vadd.f32 %v2932_v3, %v2931_v62 }
 0x3a0   : > { %v2072_v8 = vadd.f32 %v2889_v16, %v1987_v29 }
 0x3a2   : > { %v2157_v11 = vadd.f32 %v2933_v17, %v2072_v8 }
 0x3b1   : > { %v2966_v48 = vpop.f32.mrb[52].mxu1  ;;  %v3010_v33 = vpop.f32.mrb[56].mxu0 }
 0x3b2   : > { %v2967_v24 = vpop.f32.mrb[53].mxu1  ;;  %v3011_v30 = vpop.f32.mrb[57].mxu0 }
 0x3b3   : > { %v2968_v31 = vadd.f32 %v2967_v24, %v2966_v48  ;;  %v3012_v19 = vadd.f32 %v3011_v30, %v3010_v33 }
 0x3b5   : > { %v2227_v25 = vadd.f32 %v2968_v31, %v2142_v43  ;;  %v2969_v13 = vpop.f32.mrb[54].mxu1  ;;  %v3013_v36 = vpop.f32.mrb[58].mxu0 }
 0x3b6   : > { %v2970_v6 = vpop.f32.mrb[55].mxu1  ;;  %v3014_v1 = vpop.f32.mrb[59].mxu0 }
 0x3b7   : > { %v2312_v37 = vadd.f32 %v3012_v19, %v2227_v25  ;;  %v2971_v2 = vadd.f32 %v2970_v6, %v2969_v13  ;;  %v3015_v14 = vadd.f32 %v3014_v1, %v3013_v36 }
 0x3b9   : > { %v2232_v12 = vadd.f32 %v2971_v2, %v2147_v47  ;;  %v2972_v7 = vpop.f32.mrb[56].mxu1  ;;  %v3016_v56 = vpop.f32.mrb[60].mxu0 }
 0x3ba   : > { %v2973_v4 = vpop.f32.mrb[57].mxu1  ;;  %v3017_v46 = vpop.f32.mrb[61].mxu0 }
 0x3bb   : > { %v2317_v51 = vadd.f32 %v3015_v14, %v2232_v12  ;;  %v2974_v26 = vadd.f32 %v2973_v4, %v2972_v7  ;;  %v3018_v27 = vadd.f32 %v3017_v46, %v3016_v56 }
 0x3bd   : > { %v2237_v5 = vadd.f32 %v2974_v26, %v2152_v50  ;;  %v2975_v53 = vpop.f32.mrb[58].mxu1  ;;  %v3019_v54 = vpop.f32.mrb[62].mxu0 }
 0x3be   : > { %v2976_v9 = vpop.f32.mrb[59].mxu1  ;;  %v3020_v10 = vpop.f32.mrb[63].mxu0 }
 0x3bf   : > { %v2322_v15 = vadd.f32 %v3018_v27, %v2237_v5  ;;  %v2977_v28 = vadd.f32 %v2976_v9, %v2975_v53  ;;  %v3021_v32 = vadd.f32 %v3020_v10, %v3019_v54 }
 0x3c1   : > { %v2242_v18 = vadd.f32 %v2977_v28, %v2157_v11 }
 0x3c3   : > { %v2327_v29 = vadd.f32 %v3021_v32, %v2242_v18 }
 0x3d2   : > { %v3054_v22 = vpop.f32.mrb[60].mxu1  ;;  %v3098_v23 = vpop.f32.mrb[64].mxu0 }
 0x3d3   : > { %v3055_v35 = vpop.f32.mrb[61].mxu1  ;;  %v3099_v38 = vpop.f32.mrb[65].mxu0 }
 0x3d4   : > { %v3056_v59 = vadd.f32 %v3055_v35, %v3054_v22  ;;  %v3100_v60 = vadd.f32 %v3099_v38, %v3098_v23 }
 0x3d6   : > { %v2397_v39 = vadd.f32 %v3056_v59, %v2312_v37  ;;  %v3057_v40 = vpop.f32.mrb[62].mxu1  ;;  %v3101_v44 = vpop.f32.mrb[66].mxu0 }
 0x3d7   : > { %v3058_v41 = vpop.f32.mrb[63].mxu1  ;;  %v3102_v42 = vpop.f32.mrb[67].mxu0 }
 0x3d8   : > { %v3059_v43 = vadd.f32 %v3058_v41, %v3057_v40  ;;  %v3103_v55 = vadd.f32 %v3102_v42, %v3101_v44  ;;  %v2482_v57 = vadd.f32 %v3100_v60, %v2397_v39 }
 0x3da   : > { %v2402_v58 = vadd.f32 %v3059_v43, %v2317_v51  ;;  %v3060_v45 = vpop.f32.mrb[64].mxu1  ;;  %v3104_v20 = vpop.f32.mrb[68].mxu0 }
 0x3db   : > { %v3061_v21 = vpop.f32.mrb[65].mxu1  ;;  %v3105_v52 = vpop.f32.mrb[69].mxu0 }
 0x3dc   : > { %v3062_v47 = vadd.f32 %v3061_v21, %v3060_v45  ;;  %v3106_v49 = vadd.f32 %v3105_v52, %v3104_v20  ;;  %v2487_v34 = vadd.f32 %v3103_v55, %v2402_v58 }
 0x3de   : > { %v2407_v63 = vadd.f32 %v3062_v47, %v2322_v15  ;;  %v3063_v61 = vpop.f32.mrb[66].mxu1  ;;  %v3107_v62 = vpop.f32.mrb[70].mxu0 }
 0x3df   : > { %v3064_v0 = vpop.f32.mrb[67].mxu1  ;;  %v3108_v3 = vpop.f32.mrb[71].mxu0 }
 0x3e0   : > { %v3065_v50 = vadd.f32 %v3064_v0, %v3063_v61  ;;  %v3109_v16 = vadd.f32 %v3108_v3, %v3107_v62  ;;  %v2492_v17 = vadd.f32 %v3106_v49, %v2407_v63 }
 0x3e2   : > { %v2412_v8 = vadd.f32 %v3065_v50, %v2327_v29 }
 0x3e3   : > { %v3178_v11 = vpop.f32.mrb[68].mxu1 }
 0x3e4   : > { %v2572_v48 = vadd.f32 %v3178_v11, %v2487_v34  ;;  %v2566_v33 = vpop.f32.mrb[69].mxu1  ;;  %v2497_v24 = vadd.f32 %v3109_v16, %v2412_v8 }
 0x3e5   : > { %v2567_v30 = vadd.f32 %v2566_v33, %v2482_v57 }
 0x3e6   : > { %2592 = vperm.xlu1 %3609, %v2572_v48  }
 0x3e7   : > { %2587 = vperm.xlu0 %3610, %v2567_v30   ;;  %v3181_v31 = vpop.f32.mrb[70].mxu1 }
 0x3e8   : > { %v2582_v19 = vadd.f32 %v3181_v31, %v2497_v24  ;;  %v2576_v25 = vpop.f32.mrb[71].mxu1 }
 0x3e9   : > { %v2577_v13 = vadd.f32 %v2576_v25, %v2492_v17 }
 0x3eb   : > { %2602 = vperm.xlu0 %3610, %v2582_v19   ;;  %2597 = vperm.xlu1 %3609, %v2577_v13  }
 0x465   : > { %v2593_v36 = vpop.permute.xlu1 %2592 }
 0x466   : > { %3611 = vrcp.f32 %v2593_v36  ;;  %v2588_v6 = vpop.permute.xlu0 %2587 }
 0x467   : > { %3613 = vrcp.f32 %v2588_v6 }
 0x46a   : > { %v2603_v1 = vpop.permute.xlu0 %2602  ;;  %v2598_v37 = vpop.permute.xlu1 %2597 }
 0x46b   : > { %3615 = vrcp.f32 %v2603_v1 }
 0x46c   : > { %3617 = vrcp.f32 %v2598_v37 }
 0x470   : > { %v3612_v2 = vpop.eup %3611 }
 0x471   : > { %v3614_v14 = vpop.eup %3613  ;;  %v2608_v7 = vmul.f32 %v3612_v2, %v2572_v48 }
 0x472   : > { %v2606_v12 = vmul.f32 %v3614_v14, %v2567_v30 }
 0x473   : > { %2615 = vst.msk [vmem:[%s280_s20 + $0x8] sm:$0xff] %vm2613_vm8, %v2608_v7 }
 0x474   : > { %2614 = vst.msk [vmem:[%s280_s20] sm:$0xff] %vm2613_vm8, %v2606_v12 }
 0x475   : > { %v3616_v56 = vpop.eup %3615 }
 0x476   : > { %v3618_v4 = vpop.eup %3617  ;;  %v2612_v46 = vmul.f32 %v3616_v56, %v2582_v19 }
 0x477   : > { %v2610_v51 = vmul.f32 %v3618_v4, %v2577_v13 }
 0x478   : > { %2617 = vst.msk [vmem:[%s280_s20 + $0x18] sm:$0xff] %vm2613_vm8, %v2612_v46 }
 0x479   : > { %2616 = vst.msk [vmem:[%s280_s20 + $0x10] sm:$0xff] %vm2613_vm8, %v2610_v51 }
 0x47a PF: > { %s17_s24 = sadd.s32 1, %s3625_s24  }
 0x47b   : > { %p14_p4 = scmp.ge.s32.totalorder %s17_s24, 4  }
 0x47d   :  { %16 = sbr.rel (!%p14_p4) target bundleno = 1 (0x1), region = 78 }

</bundles_post_ra>
